<compile_context>
chip_gen: v7x
topology: tpu7x:2x2x1
jax: 0.10.0
libtpu: 0.0.40
codegen_flags: <defaults>
</compile_context>

<pallas_src>
import functools

import jax
import jax.numpy as jnp
from jax.experimental import pallas as pl
from jax.experimental.pallas import tpu as pltpu


def _dwconv_kernel(x_ref, w_ref, b_ref, o_ref, *, h_chunk, fuse_gelu):
    # x_ref : (BT, H, W, CT)  unpadded NHWC input block (BT batches, CT lanes)
    # w_ref : (9, CT)         depthwise weights, tap index = 3*dy + dx
    # b_ref : (1, CT)         bias
    # o_ref : (BT, H, W, CT)
    BT, H, W, CT = x_ref.shape
    f32 = jnp.float32

    # Hoisted once: weights and bias as (1, 1, CT) broadcastable vectors.
    wts = w_ref[...].astype(f32)                      # (9, CT)
    taps = [wts[k].reshape(1, 1, CT) for k in range(9)]
    bias = b_ref[...].astype(f32).reshape(1, 1, CT)

    def hmix(s, dy):
        # Horizontal 3-tap mix of a row slab s (R, W, CT) with weight row dy.
        # out[., w] = s[., w-1]*w[dy,0] + s[., w]*w[dy,1] + s[., w+1]*w[dy,2]
        # with zero halo at the W boundary.
        R = s.shape[0]
        zc = jnp.zeros((R, 1, CT), f32)
        sl = jnp.concatenate([zc, s[:, :W - 1, :]], axis=1)   # col w-1
        sr = jnp.concatenate([s[:, 1:, :], zc], axis=1)       # col w+1
        return (sl * taps[3 * dy + 0]
                + s * taps[3 * dy + 1]
                + sr * taps[3 * dy + 2])

    for b in range(BT):
        for r0 in range(0, H, h_chunk):
            r1 = min(H, r0 + h_chunk)
            R = r1 - r0
            lo = max(0, r0 - 1)
            hi = min(H, r1 + 1)
            # Per-chunk load + cast (keeps live vregs small, bf16-friendly).
            slab = x_ref[b, lo:hi].astype(f32)                # (hi-lo, W, CT)
            zrow = jnp.zeros((1, W, CT), f32)
            parts = []
            if r0 == 0:
                parts.append(zrow)                            # top zero halo
            parts.append(slab)
            if r1 == H:
                parts.append(zrow)                            # bottom zero halo
            xp = jnp.concatenate(parts, axis=0) if len(parts) > 1 else slab
            # xp[i] == input row (r0 - 1 + i), zeros at the H halo.
            out = (bias
                   + hmix(xp[0:R], 0)          # input rows h-1
                   + hmix(xp[1:R + 1], 1)      # input rows h
                   + hmix(xp[2:R + 2], 2))     # input rows h+1
            if fuse_gelu:
                # PyTorch nn.GELU() default is the exact erf form.
                out = jax.nn.gelu(out, approximate=False)
            # Single store per output row chunk (bias/act/cast fused in).
            o_ref[b, r0:r1] = out.astype(o_ref.dtype)


def dwconv_pallas(x, w, b, H, W, *, fuse_gelu=False, h_chunk=None,
                  b_tile=None, c_tile=None):
    """x: (B, N, C), w: (3, 3, C), b: (C,) -> (B, N, C).

    Note: PyTorch depthwise Conv2d weight is (C, 1, 3, 3); pass it here as
    w_torch.squeeze(1).permute(1, 2, 0) -> (3, 3, C).
    """
    B, N, C = x.shape
    assert N == H * W
    assert W >= 2
    assert w.shape == (3, 3, C), "expected depthwise weight layout (3, 3, C)"
    assert b.shape == (C,)

    xi = x.reshape(B, H, W, C)                  # NHWC, channels on lanes

    # Pad W up to a sublane multiple so every store is unmasked.  The padded
    # zero columns reproduce the conv's zero halo, so valid columns are exact.
    sub = 8 if xi.dtype == jnp.float32 else 16
    Wp = ((W + sub - 1) // sub) * sub
    if Wp != W:
        xi = jnp.pad(xi, ((0, 0), (0, 0), (0, Wp - W), (0, 0)))

    # Pad channels up to the lane width (no-op for C = 128).
    LANE = 128
    Cp = ((C + LANE - 1) // LANE) * LANE
    if Cp != C:
        xi = jnp.pad(xi, ((0, 0), (0, 0), (0, 0), (0, Cp - C)))
        w = jnp.pad(w, ((0, 0), (0, 0), (0, Cp - C)))
        b = jnp.pad(b, ((0, Cp - C),))

    # Channel tile: largest of {512,384,256,128} dividing Cp -> longer
    # contiguous DMA runs when C > 128.
    if c_tile is None:
        for cand in (512, 384, 256, 128):
            if Cp % cand == 0:
                c_tile = cand
                break

    # Fold batches so each grid step moves >= ~0.5 MiB (amortizes per-step
    # overhead / DMA latency for small feature maps).
    per_batch = H * Wp * c_tile * xi.dtype.itemsize
    if b_tile is None:
        want = max(1, (512 * 1024) // max(per_batch, 1))
        b_tile = 1
        for cand in range(min(B, want), 0, -1):
            if B % cand == 0:
                b_tile = cand
                break

    # Row-chunk size: keep per-chunk live set roughly constant as c_tile grows.
    if h_chunk is None:
        h_chunk = max(2, (8 * 128) // c_tile)
    h_chunk = min(h_chunk, H)

    w_flat = w.reshape(9, Cp)
    b2 = b.reshape(1, Cp)

    # VMEM budget from the real per-step footprint (double-buffered in + out)
    # plus headroom for in-kernel temporaries.
    in_blk = b_tile * H * Wp * c_tile * xi.dtype.itemsize
    out_blk = b_tile * H * Wp * c_tile * x.dtype.itemsize
    vmem_limit = int(min(96 * 1024 * 1024,
                         max(16 * 1024 * 1024,
                             3 * (in_blk + out_blk) + (4 << 20))))

    kernel = functools.partial(_dwconv_kernel, h_chunk=h_chunk,
                               fuse_gelu=fuse_gelu)
    out = pl.pallas_call(
        kernel,
        out_shape=jax.ShapeDtypeStruct((B, H, Wp, Cp), x.dtype),
        grid_spec=pltpu.PrefetchScalarGridSpec(
            num_scalar_prefetch=0,
            grid=(B // b_tile, Cp // c_tile),
            in_specs=[
                pl.BlockSpec((b_tile, H, Wp, c_tile),
                             lambda bi, ci: (bi, 0, 0, ci)),
                pl.BlockSpec((9, c_tile), lambda bi, ci: (0, ci)),
                pl.BlockSpec((1, c_tile), lambda bi, ci: (0, ci)),
            ],
            out_specs=pl.BlockSpec((b_tile, H, Wp, c_tile),
                                   lambda bi, ci: (bi, 0, 0, ci)),
        ),
        compiler_params=pltpu.CompilerParams(
            dimension_semantics=("parallel", "parallel"),
            vmem_limit_bytes=vmem_limit),
    )(xi, w_flat, b2)

    if Wp != W:
        out = out[:, :, :W, :]
    if Cp != C:
        out = out[..., :C]
    return out.reshape(B, N, C)


def dwconv_ref(x, w, b, H, W):
    """Pure-JAX reference (lax depthwise conv) for verification."""
    B, N, C = x.shape
    xi = x.reshape(B, H, W, C)
    k = w.reshape(3, 3, 1, C)                   # HWIO, I=1 (depthwise)
    y = jax.lax.conv_general_dilated(
        xi, k, window_strides=(1, 1), padding="SAME",
        dimension_numbers=("NHWC", "HWIO", "NHWC"),
        feature_group_count=C)
    y = y + b.reshape(1, 1, 1, C)
    return y.reshape(B, N, C)


if __name__ == "__main__":
    # Shapes consistent with CTF_block: DWConv runs on the Mlp hidden width
    # = dim * mlp_ratio; with dim=32, mlp_ratio=4 -> C=128 (lane-dense).
    B, C, Hs, Ws = 2, 128, 16, 16
    N = Hs * Ws

    key = jax.random.PRNGKey(0)
    kx, kw, kb = jax.random.split(key, 3)
    x = jax.random.normal(kx, (B, N, C), dtype=jnp.float32)
    # nn.Conv2d(dim, dim, 3, groups=dim, bias=True) weight (dim,1,3,3) passed
    # channels-last as (3, 3, dim); bias (dim,).
    w = jax.random.normal(kw, (3, 3, C), dtype=jnp.float32) * 0.1
    b = jax.random.normal(kb, (C,), dtype=jnp.float32) * 0.1

    # Plain DWConv (matches PyTorch DWConv.forward semantics).
    y = dwconv_pallas(x, w, b, Hs, Ws)
    jax.block_until_ready(y)
    y_ref = dwconv_ref(x, w, b, Hs, Ws)
    assert y.shape == (B, N, C)
    assert jnp.allclose(y, y_ref, atol=1e-5, rtol=1e-5)

    # Fused DWConv + GELU epilogue (as used inside Mlp: fc1 -> dwconv -> act).
    # Exact (erf) GELU to match PyTorch nn.GELU() default.
    yg = dwconv_pallas(x, w, b, Hs, Ws, fuse_gelu=True)
    jax.block_until_ready(yg)
    yg_ref = jax.nn.gelu(y_ref, approximate=False)
    assert jnp.allclose(yg, yg_ref, atol=1e-5, rtol=1e-5)

    # Exercise the padding paths (C not lane-multiple, W not sublane-multiple,
    # chunked H) to validate the halo/pad handling.
    B2, C2, H2, W2 = 3, 96, 10, 12
    k2 = jax.random.split(key, 6)
    x2 = jax.random.normal(k2[3], (B2, H2 * W2, C2), dtype=jnp.float32)
    w2 = jax.random.normal(k2[4], (3, 3, C2), dtype=jnp.float32) * 0.1
    b2 = jax.random.normal(k2[5], (C2,), dtype=jnp.float32) * 0.1
    y2 = dwconv_pallas(x2, w2, b2, H2, W2)
    jax.block_until_ready(y2)
    y2_ref = dwconv_ref(x2, w2, b2, H2, W2)
    assert jnp.allclose(y2, y2_ref, atol=1e-5, rtol=1e-5)

    print("KERNEL_OK")
</pallas_src>

<mosaic_0001>
module attributes {stable_mosaic.version = 11 : i64} {
  func.func @_dwconv_kernel(%arg0: i32, %arg1: i32, %arg2: memref<2x16x16x128xf32, #tpu.memory_space<vmem>>, %arg3: memref<9x128xf32, #tpu.memory_space<vmem>>, %arg4: memref<1x128xf32, #tpu.memory_space<vmem>>, %arg5: memref<2x16x16x128xf32, #tpu.memory_space<vmem>>) attributes {dimension_semantics = [#tpu.dimension_semantics<parallel>, #tpu.dimension_semantics<parallel>], iteration_bounds = array<i64: 1, 1>, scalar_prefetch = 0 : i64, scratch_operands = 0 : i64, tpu.core_type = #tpu.core_type<tc>, window_params = [{transform_indices = @transform_0, window_bounds = array<i64: 2, 16, 16, 128>}, {transform_indices = @transform_1, window_bounds = array<i64: 9, 128>}, {transform_indices = @transform_2, window_bounds = array<i64: 1, 128>}, {transform_indices = @transform_3, window_bounds = array<i64: 2, 16, 16, 128>}]} {
    %c0 = arith.constant 0 : index
    %c0_0 = arith.constant 0 : index
    %0 = vector.load %arg3[%c0, %c0_0] : memref<9x128xf32, #tpu.memory_space<vmem>>, vector<9x128xf32>
    %1 = vector.extract_strided_slice %0 {offsets = [0, 0], sizes = [1, 128], strides = [1, 1]} : vector<9x128xf32> to vector<1x128xf32>
    %2 = vector.shape_cast %1 : vector<1x128xf32> to vector<128xf32>
    %3 = vector.shape_cast %2 : vector<128xf32> to vector<1x1x128xf32>
    %4 = vector.extract_strided_slice %0 {offsets = [1, 0], sizes = [1, 128], strides = [1, 1]} : vector<9x128xf32> to vector<1x128xf32>
    %5 = vector.shape_cast %4 : vector<1x128xf32> to vector<128xf32>
    %6 = vector.shape_cast %5 : vector<128xf32> to vector<1x1x128xf32>
    %7 = vector.extract_strided_slice %0 {offsets = [2, 0], sizes = [1, 128], strides = [1, 1]} : vector<9x128xf32> to vector<1x128xf32>
    %8 = vector.shape_cast %7 : vector<1x128xf32> to vector<128xf32>
    %9 = vector.shape_cast %8 : vector<128xf32> to vector<1x1x128xf32>
    %10 = vector.extract_strided_slice %0 {offsets = [3, 0], sizes = [1, 128], strides = [1, 1]} : vector<9x128xf32> to vector<1x128xf32>
    %11 = vector.shape_cast %10 : vector<1x128xf32> to vector<128xf32>
    %12 = vector.shape_cast %11 : vector<128xf32> to vector<1x1x128xf32>
    %13 = vector.extract_strided_slice %0 {offsets = [4, 0], sizes = [1, 128], strides = [1, 1]} : vector<9x128xf32> to vector<1x128xf32>
    %14 = vector.shape_cast %13 : vector<1x128xf32> to vector<128xf32>
    %15 = vector.shape_cast %14 : vector<128xf32> to vector<1x1x128xf32>
    %16 = vector.extract_strided_slice %0 {offsets = [5, 0], sizes = [1, 128], strides = [1, 1]} : vector<9x128xf32> to vector<1x128xf32>
    %17 = vector.shape_cast %16 : vector<1x128xf32> to vector<128xf32>
    %18 = vector.shape_cast %17 : vector<128xf32> to vector<1x1x128xf32>
    %19 = vector.extract_strided_slice %0 {offsets = [6, 0], sizes = [1, 128], strides = [1, 1]} : vector<9x128xf32> to vector<1x128xf32>
    %20 = vector.shape_cast %19 : vector<1x128xf32> to vector<128xf32>
    %21 = vector.shape_cast %20 : vector<128xf32> to vector<1x1x128xf32>
    %22 = vector.extract_strided_slice %0 {offsets = [7, 0], sizes = [1, 128], strides = [1, 1]} : vector<9x128xf32> to vector<1x128xf32>
    %23 = vector.shape_cast %22 : vector<1x128xf32> to vector<128xf32>
    %24 = vector.shape_cast %23 : vector<128xf32> to vector<1x1x128xf32>
    %25 = vector.extract_strided_slice %0 {offsets = [8, 0], sizes = [1, 128], strides = [1, 1]} : vector<9x128xf32> to vector<1x128xf32>
    %26 = vector.shape_cast %25 : vector<1x128xf32> to vector<128xf32>
    %27 = vector.shape_cast %26 : vector<128xf32> to vector<1x1x128xf32>
    %c0_1 = arith.constant 0 : index
    %c0_2 = arith.constant 0 : index
    %28 = vector.load %arg4[%c0_1, %c0_2] : memref<1x128xf32, #tpu.memory_space<vmem>>, vector<1x128xf32>
    %29 = vector.shape_cast %28 : vector<1x128xf32> to vector<1x1x128xf32>
    %c0_3 = arith.constant 0 : index
    %c0_4 = arith.constant 0 : index
    %c0_5 = arith.constant 0 : index
    %c0_6 = arith.constant 0 : index
    %30 = vector.load %arg2[%c0_3, %c0_4, %c0_5, %c0_6] : memref<2x16x16x128xf32, #tpu.memory_space<vmem>>, vector<1x9x16x128xf32>
    %31 = vector.shape_cast %30 : vector<1x9x16x128xf32> to vector<9x16x128xf32>
    %cst = arith.constant 0.000000e+00 : f32
    %32 = vector.broadcast %cst : f32 to vector<1x16x128xf32>
    %33 = tpu.concatenate %32, %31 in 0 : vector<1x16x128xf32>, vector<9x16x128xf32> -> vector<10x16x128xf32>
    %34 = vector.extract_strided_slice %33 {offsets = [0, 0, 0], sizes = [8, 16, 128], strides = [1, 1, 1]} : vector<10x16x128xf32> to vector<8x16x128xf32>
    %cst_7 = arith.constant 0.000000e+00 : f32
    %35 = vector.broadcast %cst_7 : f32 to vector<8x1x128xf32>
    %36 = vector.extract_strided_slice %34 {offsets = [0, 0, 0], sizes = [8, 15, 128], strides = [1, 1, 1]} : vector<8x16x128xf32> to vector<8x15x128xf32>
    %37 = tpu.concatenate %35, %36 in 1 : vector<8x1x128xf32>, vector<8x15x128xf32> -> vector<8x16x128xf32>
    %38 = vector.extract_strided_slice %34 {offsets = [0, 1, 0], sizes = [8, 15, 128], strides = [1, 1, 1]} : vector<8x16x128xf32> to vector<8x15x128xf32>
    %39 = tpu.concatenate %38, %35 in 1 : vector<8x15x128xf32>, vector<8x1x128xf32> -> vector<8x16x128xf32>
    %40 = vector.broadcast %3 : vector<1x1x128xf32> to vector<8x16x128xf32>
    %41 = arith.mulf %37, %40 : vector<8x16x128xf32>
    %42 = vector.broadcast %6 : vector<1x1x128xf32> to vector<8x16x128xf32>
    %43 = arith.mulf %34, %42 : vector<8x16x128xf32>
    %44 = arith.addf %41, %43 : vector<8x16x128xf32>
    %45 = vector.broadcast %9 : vector<1x1x128xf32> to vector<8x16x128xf32>
    %46 = arith.mulf %39, %45 : vector<8x16x128xf32>
    %47 = arith.addf %44, %46 : vector<8x16x128xf32>
    %48 = vector.broadcast %29 : vector<1x1x128xf32> to vector<8x16x128xf32>
    %49 = arith.addf %48, %47 : vector<8x16x128xf32>
    %50 = vector.extract_strided_slice %33 {offsets = [1, 0, 0], sizes = [8, 16, 128], strides = [1, 1, 1]} : vector<10x16x128xf32> to vector<8x16x128xf32>
    %cst_8 = arith.constant 0.000000e+00 : f32
    %51 = vector.broadcast %cst_8 : f32 to vector<8x1x128xf32>
    %52 = vector.extract_strided_slice %50 {offsets = [0, 0, 0], sizes = [8, 15, 128], strides = [1, 1, 1]} : vector<8x16x128xf32> to vector<8x15x128xf32>
    %53 = tpu.concatenate %51, %52 in 1 : vector<8x1x128xf32>, vector<8x15x128xf32> -> vector<8x16x128xf32>
    %54 = vector.extract_strided_slice %50 {offsets = [0, 1, 0], sizes = [8, 15, 128], strides = [1, 1, 1]} : vector<8x16x128xf32> to vector<8x15x128xf32>
    %55 = tpu.concatenate %54, %51 in 1 : vector<8x15x128xf32>, vector<8x1x128xf32> -> vector<8x16x128xf32>
    %56 = vector.broadcast %12 : vector<1x1x128xf32> to vector<8x16x128xf32>
    %57 = arith.mulf %53, %56 : vector<8x16x128xf32>
    %58 = vector.broadcast %15 : vector<1x1x128xf32> to vector<8x16x128xf32>
    %59 = arith.mulf %50, %58 : vector<8x16x128xf32>
    %60 = arith.addf %57, %59 : vector<8x16x128xf32>
    %61 = vector.broadcast %18 : vector<1x1x128xf32> to vector<8x16x128xf32>
    %62 = arith.mulf %55, %61 : vector<8x16x128xf32>
    %63 = arith.addf %60, %62 : vector<8x16x128xf32>
    %64 = arith.addf %49, %63 : vector<8x16x128xf32>
    %65 = vector.extract_strided_slice %33 {offsets = [2, 0, 0], sizes = [8, 16, 128], strides = [1, 1, 1]} : vector<10x16x128xf32> to vector<8x16x128xf32>
    %cst_9 = arith.constant 0.000000e+00 : f32
    %66 = vector.broadcast %cst_9 : f32 to vector<8x1x128xf32>
    %67 = vector.extract_strided_slice %65 {offsets = [0, 0, 0], sizes = [8, 15, 128], strides = [1, 1, 1]} : vector<8x16x128xf32> to vector<8x15x128xf32>
    %68 = tpu.concatenate %66, %67 in 1 : vector<8x1x128xf32>, vector<8x15x128xf32> -> vector<8x16x128xf32>
    %69 = vector.extract_strided_slice %65 {offsets = [0, 1, 0], sizes = [8, 15, 128], strides = [1, 1, 1]} : vector<8x16x128xf32> to vector<8x15x128xf32>
    %70 = tpu.concatenate %69, %66 in 1 : vector<8x15x128xf32>, vector<8x1x128xf32> -> vector<8x16x128xf32>
    %71 = vector.broadcast %21 : vector<1x1x128xf32> to vector<8x16x128xf32>
    %72 = arith.mulf %68, %71 : vector<8x16x128xf32>
    %73 = vector.broadcast %24 : vector<1x1x128xf32> to vector<8x16x128xf32>
    %74 = arith.mulf %65, %73 : vector<8x16x128xf32>
    %75 = arith.addf %72, %74 : vector<8x16x128xf32>
    %76 = vector.broadcast %27 : vector<1x1x128xf32> to vector<8x16x128xf32>
    %77 = arith.mulf %70, %76 : vector<8x16x128xf32>
    %78 = arith.addf %75, %77 : vector<8x16x128xf32>
    %79 = arith.addf %64, %78 : vector<8x16x128xf32>
    %c0_10 = arith.constant 0 : index
    %c0_11 = arith.constant 0 : index
    %c0_12 = arith.constant 0 : index
    %c0_13 = arith.constant 0 : index
    %80 = vector.load %arg5[%c0_10, %c0_11, %c0_12, %c0_13] : memref<2x16x16x128xf32, #tpu.memory_space<vmem>>, vector<1x8x16x128xf32>
    %81 = vector.shape_cast %80 : vector<1x8x16x128xf32> to vector<8x16x128xf32>
    %82 = vector.shape_cast %79 : vector<8x16x128xf32> to vector<1x8x16x128xf32>
    tpu.vector_store %arg5[%c0_10, %c0_11, %c0_12, %c0_13], %82 {strides = array<i32>} : memref<2x16x16x128xf32, #tpu.memory_space<vmem>>, vector<1x8x16x128xf32>,
    %c0_14 = arith.constant 0 : index
    %c7 = arith.constant 7 : index
    %c0_15 = arith.constant 0 : index
    %c0_16 = arith.constant 0 : index
    %83 = vector.load %arg2[%c0_14, %c7, %c0_15, %c0_16] : memref<2x16x16x128xf32, #tpu.memory_space<vmem>>, vector<1x9x16x128xf32>
    %84 = vector.shape_cast %83 : vector<1x9x16x128xf32> to vector<9x16x128xf32>
    %cst_17 = arith.constant 0.000000e+00 : f32
    %85 = vector.broadcast %cst_17 : f32 to vector<1x16x128xf32>
    %86 = tpu.concatenate %84, %85 in 0 : vector<9x16x128xf32>, vector<1x16x128xf32> -> vector<10x16x128xf32>
    %87 = vector.extract_strided_slice %86 {offsets = [0, 0, 0], sizes = [8, 16, 128], strides = [1, 1, 1]} : vector<10x16x128xf32> to vector<8x16x128xf32>
    %cst_18 = arith.constant 0.000000e+00 : f32
    %88 = vector.broadcast %cst_18 : f32 to vector<8x1x128xf32>
    %89 = vector.extract_strided_slice %87 {offsets = [0, 0, 0], sizes = [8, 15, 128], strides = [1, 1, 1]} : vector<8x16x128xf32> to vector<8x15x128xf32>
    %90 = tpu.concatenate %88, %89 in 1 : vector<8x1x128xf32>, vector<8x15x128xf32> -> vector<8x16x128xf32>
    %91 = vector.extract_strided_slice %87 {offsets = [0, 1, 0], sizes = [8, 15, 128], strides = [1, 1, 1]} : vector<8x16x128xf32> to vector<8x15x128xf32>
    %92 = tpu.concatenate %91, %88 in 1 : vector<8x15x128xf32>, vector<8x1x128xf32> -> vector<8x16x128xf32>
    %93 = vector.broadcast %3 : vector<1x1x128xf32> to vector<8x16x128xf32>
    %94 = arith.mulf %90, %93 : vector<8x16x128xf32>
    %95 = vector.broadcast %6 : vector<1x1x128xf32> to vector<8x16x128xf32>
    %96 = arith.mulf %87, %95 : vector<8x16x128xf32>
    %97 = arith.addf %94, %96 : vector<8x16x128xf32>
    %98 = vector.broadcast %9 : vector<1x1x128xf32> to vector<8x16x128xf32>
    %99 = arith.mulf %92, %98 : vector<8x16x128xf32>
    %100 = arith.addf %97, %99 : vector<8x16x128xf32>
    %101 = vector.broadcast %29 : vector<1x1x128xf32> to vector<8x16x128xf32>
    %102 = arith.addf %101, %100 : vector<8x16x128xf32>
    %103 = vector.extract_strided_slice %86 {offsets = [1, 0, 0], sizes = [8, 16, 128], strides = [1, 1, 1]} : vector<10x16x128xf32> to vector<8x16x128xf32>
    %cst_19 = arith.constant 0.000000e+00 : f32
    %104 = vector.broadcast %cst_19 : f32 to vector<8x1x128xf32>
    %105 = vector.extract_strided_slice %103 {offsets = [0, 0, 0], sizes = [8, 15, 128], strides = [1, 1, 1]} : vector<8x16x128xf32> to vector<8x15x128xf32>
    %106 = tpu.concatenate %104, %105 in 1 : vector<8x1x128xf32>, vector<8x15x128xf32> -> vector<8x16x128xf32>
    %107 = vector.extract_strided_slice %103 {offsets = [0, 1, 0], sizes = [8, 15, 128], strides = [1, 1, 1]} : vector<8x16x128xf32> to vector<8x15x128xf32>
    %108 = tpu.concatenate %107, %104 in 1 : vector<8x15x128xf32>, vector<8x1x128xf32> -> vector<8x16x128xf32>
    %109 = vector.broadcast %12 : vector<1x1x128xf32> to vector<8x16x128xf32>
    %110 = arith.mulf %106, %109 : vector<8x16x128xf32>
    %111 = vector.broadcast %15 : vector<1x1x128xf32> to vector<8x16x128xf32>
    %112 = arith.mulf %103, %111 : vector<8x16x128xf32>
    %113 = arith.addf %110, %112 : vector<8x16x128xf32>
    %114 = vector.broadcast %18 : vector<1x1x128xf32> to vector<8x16x128xf32>
    %115 = arith.mulf %108, %114 : vector<8x16x128xf32>
    %116 = arith.addf %113, %115 : vector<8x16x128xf32>
    %117 = arith.addf %102, %116 : vector<8x16x128xf32>
    %118 = vector.extract_strided_slice %86 {offsets = [2, 0, 0], sizes = [8, 16, 128], strides = [1, 1, 1]} : vector<10x16x128xf32> to vector<8x16x128xf32>
    %cst_20 = arith.constant 0.000000e+00 : f32
    %119 = vector.broadcast %cst_20 : f32 to vector<8x1x128xf32>
    %120 = vector.extract_strided_slice %118 {offsets = [0, 0, 0], sizes = [8, 15, 128], strides = [1, 1, 1]} : vector<8x16x128xf32> to vector<8x15x128xf32>
    %121 = tpu.concatenate %119, %120 in 1 : vector<8x1x128xf32>, vector<8x15x128xf32> -> vector<8x16x128xf32>
    %122 = vector.extract_strided_slice %118 {offsets = [0, 1, 0], sizes = [8, 15, 128], strides = [1, 1, 1]} : vector<8x16x128xf32> to vector<8x15x128xf32>
    %123 = tpu.concatenate %122, %119 in 1 : vector<8x15x128xf32>, vector<8x1x128xf32> -> vector<8x16x128xf32>
    %124 = vector.broadcast %21 : vector<1x1x128xf32> to vector<8x16x128xf32>
    %125 = arith.mulf %121, %124 : vector<8x16x128xf32>
    %126 = vector.broadcast %24 : vector<1x1x128xf32> to vector<8x16x128xf32>
    %127 = arith.mulf %118, %126 : vector<8x16x128xf32>
    %128 = arith.addf %125, %127 : vector<8x16x128xf32>
    %129 = vector.broadcast %27 : vector<1x1x128xf32> to vector<8x16x128xf32>
    %130 = arith.mulf %123, %129 : vector<8x16x128xf32>
    %131 = arith.addf %128, %130 : vector<8x16x128xf32>
    %132 = arith.addf %117, %131 : vector<8x16x128xf32>
    %c0_21 = arith.constant 0 : index
    %c8 = arith.constant 8 : index
    %c0_22 = arith.constant 0 : index
    %c0_23 = arith.constant 0 : index
    %133 = vector.load %arg5[%c0_21, %c8, %c0_22, %c0_23] : memref<2x16x16x128xf32, #tpu.memory_space<vmem>>, vector<1x8x16x128xf32>
    %134 = vector.shape_cast %133 : vector<1x8x16x128xf32> to vector<8x16x128xf32>
    %135 = vector.shape_cast %132 : vector<8x16x128xf32> to vector<1x8x16x128xf32>
    tpu.vector_store %arg5[%c0_21, %c8, %c0_22, %c0_23], %135 {strides = array<i32>} : memref<2x16x16x128xf32, #tpu.memory_space<vmem>>, vector<1x8x16x128xf32>,
    %c1 = arith.constant 1 : index
    %c0_24 = arith.constant 0 : index
    %c0_25 = arith.constant 0 : index
    %c0_26 = arith.constant 0 : index
    %136 = vector.load %arg2[%c1, %c0_24, %c0_25, %c0_26] : memref<2x16x16x128xf32, #tpu.memory_space<vmem>>, vector<1x9x16x128xf32>
    %137 = vector.shape_cast %136 : vector<1x9x16x128xf32> to vector<9x16x128xf32>
    %cst_27 = arith.constant 0.000000e+00 : f32
    %138 = vector.broadcast %cst_27 : f32 to vector<1x16x128xf32>
    %139 = tpu.concatenate %138, %137 in 0 : vector<1x16x128xf32>, vector<9x16x128xf32> -> vector<10x16x128xf32>
    %140 = vector.extract_strided_slice %139 {offsets = [0, 0, 0], sizes = [8, 16, 128], strides = [1, 1, 1]} : vector<10x16x128xf32> to vector<8x16x128xf32>
    %cst_28 = arith.constant 0.000000e+00 : f32
    %141 = vector.broadcast %cst_28 : f32 to vector<8x1x128xf32>
    %142 = vector.extract_strided_slice %140 {offsets = [0, 0, 0], sizes = [8, 15, 128], strides = [1, 1, 1]} : vector<8x16x128xf32> to vector<8x15x128xf32>
    %143 = tpu.concatenate %141, %142 in 1 : vector<8x1x128xf32>, vector<8x15x128xf32> -> vector<8x16x128xf32>
    %144 = vector.extract_strided_slice %140 {offsets = [0, 1, 0], sizes = [8, 15, 128], strides = [1, 1, 1]} : vector<8x16x128xf32> to vector<8x15x128xf32>
    %145 = tpu.concatenate %144, %141 in 1 : vector<8x15x128xf32>, vector<8x1x128xf32> -> vector<8x16x128xf32>
    %146 = vector.broadcast %3 : vector<1x1x128xf32> to vector<8x16x128xf32>
    %147 = arith.mulf %143, %146 : vector<8x16x128xf32>
    %148 = vector.broadcast %6 : vector<1x1x128xf32> to vector<8x16x128xf32>
    %149 = arith.mulf %140, %148 : vector<8x16x128xf32>
    %150 = arith.addf %147, %149 : vector<8x16x128xf32>
    %151 = vector.broadcast %9 : vector<1x1x128xf32> to vector<8x16x128xf32>
    %152 = arith.mulf %145, %151 : vector<8x16x128xf32>
    %153 = arith.addf %150, %152 : vector<8x16x128xf32>
    %154 = vector.broadcast %29 : vector<1x1x128xf32> to vector<8x16x128xf32>
    %155 = arith.addf %154, %153 : vector<8x16x128xf32>
    %156 = vector.extract_strided_slice %139 {offsets = [1, 0, 0], sizes = [8, 16, 128], strides = [1, 1, 1]} : vector<10x16x128xf32> to vector<8x16x128xf32>
    %cst_29 = arith.constant 0.000000e+00 : f32
    %157 = vector.broadcast %cst_29 : f32 to vector<8x1x128xf32>
    %158 = vector.extract_strided_slice %156 {offsets = [0, 0, 0], sizes = [8, 15, 128], strides = [1, 1, 1]} : vector<8x16x128xf32> to vector<8x15x128xf32>
    %159 = tpu.concatenate %157, %158 in 1 : vector<8x1x128xf32>, vector<8x15x128xf32> -> vector<8x16x128xf32>
    %160 = vector.extract_strided_slice %156 {offsets = [0, 1, 0], sizes = [8, 15, 128], strides = [1, 1, 1]} : vector<8x16x128xf32> to vector<8x15x128xf32>
    %161 = tpu.concatenate %160, %157 in 1 : vector<8x15x128xf32>, vector<8x1x128xf32> -> vector<8x16x128xf32>
    %162 = vector.broadcast %12 : vector<1x1x128xf32> to vector<8x16x128xf32>
    %163 = arith.mulf %159, %162 : vector<8x16x128xf32>
    %164 = vector.broadcast %15 : vector<1x1x128xf32> to vector<8x16x128xf32>
    %165 = arith.mulf %156, %164 : vector<8x16x128xf32>
    %166 = arith.addf %163, %165 : vector<8x16x128xf32>
    %167 = vector.broadcast %18 : vector<1x1x128xf32> to vector<8x16x128xf32>
    %168 = arith.mulf %161, %167 : vector<8x16x128xf32>
    %169 = arith.addf %166, %168 : vector<8x16x128xf32>
    %170 = arith.addf %155, %169 : vector<8x16x128xf32>
    %171 = vector.extract_strided_slice %139 {offsets = [2, 0, 0], sizes = [8, 16, 128], strides = [1, 1, 1]} : vector<10x16x128xf32> to vector<8x16x128xf32>
    %cst_30 = arith.constant 0.000000e+00 : f32
    %172 = vector.broadcast %cst_30 : f32 to vector<8x1x128xf32>
    %173 = vector.extract_strided_slice %171 {offsets = [0, 0, 0], sizes = [8, 15, 128], strides = [1, 1, 1]} : vector<8x16x128xf32> to vector<8x15x128xf32>
    %174 = tpu.concatenate %172, %173 in 1 : vector<8x1x128xf32>, vector<8x15x128xf32> -> vector<8x16x128xf32>
    %175 = vector.extract_strided_slice %171 {offsets = [0, 1, 0], sizes = [8, 15, 128], strides = [1, 1, 1]} : vector<8x16x128xf32> to vector<8x15x128xf32>
    %176 = tpu.concatenate %175, %172 in 1 : vector<8x15x128xf32>, vector<8x1x128xf32> -> vector<8x16x128xf32>
    %177 = vector.broadcast %21 : vector<1x1x128xf32> to vector<8x16x128xf32>
    %178 = arith.mulf %174, %177 : vector<8x16x128xf32>
    %179 = vector.broadcast %24 : vector<1x1x128xf32> to vector<8x16x128xf32>
    %180 = arith.mulf %171, %179 : vector<8x16x128xf32>
    %181 = arith.addf %178, %180 : vector<8x16x128xf32>
    %182 = vector.broadcast %27 : vector<1x1x128xf32> to vector<8x16x128xf32>
    %183 = arith.mulf %176, %182 : vector<8x16x128xf32>
    %184 = arith.addf %181, %183 : vector<8x16x128xf32>
    %185 = arith.addf %170, %184 : vector<8x16x128xf32>
    %c1_31 = arith.constant 1 : index
    %c0_32 = arith.constant 0 : index
    %c0_33 = arith.constant 0 : index
    %c0_34 = arith.constant 0 : index
    %186 = vector.load %arg5[%c1_31, %c0_32, %c0_33, %c0_34] : memref<2x16x16x128xf32, #tpu.memory_space<vmem>>, vector<1x8x16x128xf32>
    %187 = vector.shape_cast %186 : vector<1x8x16x128xf32> to vector<8x16x128xf32>
    %188 = vector.shape_cast %185 : vector<8x16x128xf32> to vector<1x8x16x128xf32>
    tpu.vector_store %arg5[%c1_31, %c0_32, %c0_33, %c0_34], %188 {strides = array<i32>} : memref<2x16x16x128xf32, #tpu.memory_space<vmem>>, vector<1x8x16x128xf32>,
    %c1_35 = arith.constant 1 : index
    %c7_36 = arith.constant 7 : index
    %c0_37 = arith.constant 0 : index
    %c0_38 = arith.constant 0 : index
    %189 = vector.load %arg2[%c1_35, %c7_36, %c0_37, %c0_38] : memref<2x16x16x128xf32, #tpu.memory_space<vmem>>, vector<1x9x16x128xf32>
    %190 = vector.shape_cast %189 : vector<1x9x16x128xf32> to vector<9x16x128xf32>
    %cst_39 = arith.constant 0.000000e+00 : f32
    %191 = vector.broadcast %cst_39 : f32 to vector<1x16x128xf32>
    %192 = tpu.concatenate %190, %191 in 0 : vector<9x16x128xf32>, vector<1x16x128xf32> -> vector<10x16x128xf32>
    %193 = vector.extract_strided_slice %192 {offsets = [0, 0, 0], sizes = [8, 16, 128], strides = [1, 1, 1]} : vector<10x16x128xf32> to vector<8x16x128xf32>
    %cst_40 = arith.constant 0.000000e+00 : f32
    %194 = vector.broadcast %cst_40 : f32 to vector<8x1x128xf32>
    %195 = vector.extract_strided_slice %193 {offsets = [0, 0, 0], sizes = [8, 15, 128], strides = [1, 1, 1]} : vector<8x16x128xf32> to vector<8x15x128xf32>
    %196 = tpu.concatenate %194, %195 in 1 : vector<8x1x128xf32>, vector<8x15x128xf32> -> vector<8x16x128xf32>
    %197 = vector.extract_strided_slice %193 {offsets = [0, 1, 0], sizes = [8, 15, 128], strides = [1, 1, 1]} : vector<8x16x128xf32> to vector<8x15x128xf32>
    %198 = tpu.concatenate %197, %194 in 1 : vector<8x15x128xf32>, vector<8x1x128xf32> -> vector<8x16x128xf32>
    %199 = vector.broadcast %3 : vector<1x1x128xf32> to vector<8x16x128xf32>
    %200 = arith.mulf %196, %199 : vector<8x16x128xf32>
    %201 = vector.broadcast %6 : vector<1x1x128xf32> to vector<8x16x128xf32>
    %202 = arith.mulf %193, %201 : vector<8x16x128xf32>
    %203 = arith.addf %200, %202 : vector<8x16x128xf32>
    %204 = vector.broadcast %9 : vector<1x1x128xf32> to vector<8x16x128xf32>
    %205 = arith.mulf %198, %204 : vector<8x16x128xf32>
    %206 = arith.addf %203, %205 : vector<8x16x128xf32>
    %207 = vector.broadcast %29 : vector<1x1x128xf32> to vector<8x16x128xf32>
    %208 = arith.addf %207, %206 : vector<8x16x128xf32>
    %209 = vector.extract_strided_slice %192 {offsets = [1, 0, 0], sizes = [8, 16, 128], strides = [1, 1, 1]} : vector<10x16x128xf32> to vector<8x16x128xf32>
    %cst_41 = arith.constant 0.000000e+00 : f32
    %210 = vector.broadcast %cst_41 : f32 to vector<8x1x128xf32>
    %211 = vector.extract_strided_slice %209 {offsets = [0, 0, 0], sizes = [8, 15, 128], strides = [1, 1, 1]} : vector<8x16x128xf32> to vector<8x15x128xf32>
    %212 = tpu.concatenate %210, %211 in 1 : vector<8x1x128xf32>, vector<8x15x128xf32> -> vector<8x16x128xf32>
    %213 = vector.extract_strided_slice %209 {offsets = [0, 1, 0], sizes = [8, 15, 128], strides = [1, 1, 1]} : vector<8x16x128xf32> to vector<8x15x128xf32>
    %214 = tpu.concatenate %213, %210 in 1 : vector<8x15x128xf32>, vector<8x1x128xf32> -> vector<8x16x128xf32>
    %215 = vector.broadcast %12 : vector<1x1x128xf32> to vector<8x16x128xf32>
    %216 = arith.mulf %212, %215 : vector<8x16x128xf32>
    %217 = vector.broadcast %15 : vector<1x1x128xf32> to vector<8x16x128xf32>
    %218 = arith.mulf %209, %217 : vector<8x16x128xf32>
    %219 = arith.addf %216, %218 : vector<8x16x128xf32>
    %220 = vector.broadcast %18 : vector<1x1x128xf32> to vector<8x16x128xf32>
    %221 = arith.mulf %214, %220 : vector<8x16x128xf32>
    %222 = arith.addf %219, %221 : vector<8x16x128xf32>
    %223 = arith.addf %208, %222 : vector<8x16x128xf32>
    %224 = vector.extract_strided_slice %192 {offsets = [2, 0, 0], sizes = [8, 16, 128], strides = [1, 1, 1]} : vector<10x16x128xf32> to vector<8x16x128xf32>
    %cst_42 = arith.constant 0.000000e+00 : f32
    %225 = vector.broadcast %cst_42 : f32 to vector<8x1x128xf32>
    %226 = vector.extract_strided_slice %224 {offsets = [0, 0, 0], sizes = [8, 15, 128], strides = [1, 1, 1]} : vector<8x16x128xf32> to vector<8x15x128xf32>
    %227 = tpu.concatenate %225, %226 in 1 : vector<8x1x128xf32>, vector<8x15x128xf32> -> vector<8x16x128xf32>
    %228 = vector.extract_strided_slice %224 {offsets = [0, 1, 0], sizes = [8, 15, 128], strides = [1, 1, 1]} : vector<8x16x128xf32> to vector<8x15x128xf32>
    %229 = tpu.concatenate %228, %225 in 1 : vector<8x15x128xf32>, vector<8x1x128xf32> -> vector<8x16x128xf32>
    %230 = vector.broadcast %21 : vector<1x1x128xf32> to vector<8x16x128xf32>
    %231 = arith.mulf %227, %230 : vector<8x16x128xf32>
    %232 = vector.broadcast %24 : vector<1x1x128xf32> to vector<8x16x128xf32>
    %233 = arith.mulf %224, %232 : vector<8x16x128xf32>
    %234 = arith.addf %231, %233 : vector<8x16x128xf32>
    %235 = vector.broadcast %27 : vector<1x1x128xf32> to vector<8x16x128xf32>
    %236 = arith.mulf %229, %235 : vector<8x16x128xf32>
    %237 = arith.addf %234, %236 : vector<8x16x128xf32>
    %238 = arith.addf %223, %237 : vector<8x16x128xf32>
    %c1_43 = arith.constant 1 : index
    %c8_44 = arith.constant 8 : index
    %c0_45 = arith.constant 0 : index
    %c0_46 = arith.constant 0 : index
    %239 = vector.load %arg5[%c1_43, %c8_44, %c0_45, %c0_46] : memref<2x16x16x128xf32, #tpu.memory_space<vmem>>, vector<1x8x16x128xf32>
    %240 = vector.shape_cast %239 : vector<1x8x16x128xf32> to vector<8x16x128xf32>
    %241 = vector.shape_cast %238 : vector<8x16x128xf32> to vector<1x8x16x128xf32>
    tpu.vector_store %arg5[%c1_43, %c8_44, %c0_45, %c0_46], %241 {strides = array<i32>} : memref<2x16x16x128xf32, #tpu.memory_space<vmem>>, vector<1x8x16x128xf32>,
    return
  }
  func.func @transform_0(%arg0: i32, %arg1: i32) -> (i32, i32, i32, i32) {
    %c0_i32 = arith.constant 0 : i32
    %c0_i32_0 = arith.constant 0 : i32
    %c0_i32_1 = arith.constant 0 : i32
    return %arg0, %c0_i32, %c0_i32_0, %arg1 : i32, i32, i32, i32
  }
  func.func @transform_1(%arg0: i32, %arg1: i32) -> (i32, i32) {
    %c0_i32 = arith.constant 0 : i32
    %c0_i32_0 = arith.constant 0 : i32
    return %c0_i32, %arg1 : i32, i32
  }
  func.func @transform_2(%arg0: i32, %arg1: i32) -> (i32, i32) {
    %c0_i32 = arith.constant 0 : i32
    %c0_i32_0 = arith.constant 0 : i32
    return %c0_i32, %arg1 : i32, i32
  }
  func.func @transform_3(%arg0: i32, %arg1: i32) -> (i32, i32, i32, i32) {
    %c0_i32 = arith.constant 0 : i32
    %c0_i32_0 = arith.constant 0 : i32
    %c0_i32_1 = arith.constant 0 : i32
    return %arg0, %c0_i32, %c0_i32_0, %arg1 : i32, i32, i32, i32
  }
}

</mosaic_0001>

<bundles_post_ra>
// kernel: tpu_custom_call.1
= control target key start
LH: loop header
LB: loop body
LE: loop exit
PB: predicated region body
PF: predicated region fallthrough
CT: control target
= control target key end

     0   :  { %8 = vsyncpa [#allocation3], 0  ;;  %s3861_s0 = inlined_call_operand.hbm [shape: f32[2,16,16,128], index: 0, kind: input, shape index: {}]   ;;  %s3862_s1 = inlined_call_operand.hbm [shape: f32[9,128], index: 1, kind: input, shape index: {}]   ;;  %s3863_s2 = inlined_call_operand.vmem [shape: f32[1,128], index: 2, kind: input, shape index: {}]   ;;  %s3864_s3 = inlined_call_operand.hbm [shape: f32[2,16,16,128], index: 3, kind: output, shape index: {}]  }
   0x1   :  { %9 = vsyncpa [#allocation6], 0 }
   0x2   :  { %10 = vsyncpa [#allocation4], 0  ;;  %s1977_s12 = smov [#allocation2]   ;;  %s1905_s16 = scalar_lea.hbm %s3861_s0, 8192 }
   0x3   :  { %s16_s13 = sshll.u32 %s1977_s12, 4  ;;  %p1906_p0 = scmp.ne.s32.totalorder %s3861_s0, %s1905_s16  ;;  %s17_s13 = int_to_ptr.vmem [resolvable:$true] %s16_s13 }
   0x4   :  { %p1909_p1 = scmp.lt.u32.totalorder %s1905_s16, %s3861_s0 }
   0x6   :  { %p1911_p2 = pnand %p1909_p1, %p1906_p0 }
   0x8   :  { %1914 = shalt.err (!%p1911_p2)
}
   0x9   :  { %s1915_s21 = scalar_lea.vmem %s17_s13, 8192  ;;  %p1920_p4 = scmp.lt.s32.totalorder %s17_s13, %s17_s13 }
   0xa   :  { %p1916_p3 = scmp.ne.s32.totalorder %s17_s13, %s1915_s21  ;;  %p1921_p5 = scmp.lt.s32.totalorder %s1915_s21, %s1915_s21 }
   0xc   :  { %p1922_p6 = por %p1921_p5, %p1920_p4 }
   0xe   :  { %p1923_p7 = pnand %p1922_p6, %p1916_p3 }
  0x10   :  { %1926 = shalt.err (!%p1923_p7)
}
  0x11   :  { %s1978_s22 = smov 128   ;;  %s1979_s23 = smov 8  }
  0x12   :  { %22 = dma.hbm_to_vmem [thread:$0]  %s3861_s0, 8192, %s17_s13, [#allocation3], %s1978_s22, %s1978_s22, %s1979_s23  }
  0x13   :  { %s1980_s26 = smov [#allocation5]   ;;  %s1927_s30 = scalar_lea.hbm %s3862_s1, 256 }
  0x14   :  { %s28_s27 = sshll.u32 %s1980_s26, 4  ;;  %p1928_p8 = scmp.ne.s32.totalorder %s3862_s1, %s1927_s30  ;;  %s29_s27 = int_to_ptr.vmem [resolvable:$true] %s28_s27 }
  0x15   :  { %p1931_p9 = scmp.lt.u32.totalorder %s1927_s30, %s3862_s1 }
  0x17   :  { %p1933_p10 = pnand %p1931_p9, %p1928_p8 }
  0x19   :  { %1936 = shalt.err (!%p1933_p10)
}
  0x1a   :  { %s1937_s8 = scalar_lea.vmem %s29_s27, 256  ;;  %p1942_p12 = scmp.lt.s32.totalorder %s29_s27, %s29_s27 }
  0x1b   :  { %p1938_p11 = scmp.ne.s32.totalorder %s29_s27, %s1937_s8  ;;  %p1943_p13 = scmp.lt.s32.totalorder %s1937_s8, %s1937_s8 }
  0x1d   :  { %p1944_p0 = por %p1943_p13, %p1942_p12 }
  0x1f   :  { %p1945_p1 = pnand %p1944_p0, %p1938_p11 }
  0x21   :  { %1948 = shalt.err (!%p1945_p1)
}
  0x22   :  { %34 = dma.hbm_to_vmem [thread:$0]  %s3862_s1, 256, %s29_s27, [#allocation6], %s1978_s22, %s1978_s22, %s1979_s23  }
  0x23   :  { %1971 = dma.done.wait [#allocation3], 8192  }
  0x24   :  { %1972 = vsyncadd [#allocation3], 4294959104 }
  0x25   :  { %1973 = dma.done.wait [#allocation6], 256  }
  0x26   :  { %1974 = vsyncadd [#allocation6], 4294967040  ;;  %v175_v0 = vlaneseq  ;;  %v1981_v1 = vmov 0.0   ;;  %vm79_vm0 = vcmask 1040384   ;;  %vm127_vm1 = vcmask 1046528   ;;  %v43_v11 = vld [vmem:[#allocation5] sm:$0xff] }
  0x27   :  { %v2033_v2 = vrot.slane %v1981_v1, 7  ;;  %v2035_v3 = vrot.slane %v1981_v1, 1  ;;  %v2045_v16 = vld [vmem:[#allocation2] sm:$0xff]  ;;  %v2047_v17 = vld [vmem:[#allocation2 + $0x8] sm:$0xff]  ;;  %v2049_v18 = vld [vmem:[#allocation2 + $0x10] sm:$0xff] }
  0x28   :  { %v176_v4 = vshrl.u32 %v175_v0, 7  ;;  %v2059_v23 = vld [vmem:[#allocation2 + $0x18] sm:$0xff]  ;;  %v82_v24 = vrot.slane %v2045_v16, 7  ;;  %v85_v25 = vrot.slane %v2049_v18, 7  ;;  %v130_v26 = vrot.slane %v2045_v16, 1  ;;  %v2122_v62 = vld [vmem:[#allocation2 + $0x20] sm:$0xff] }
  0x29   :  { %v2039_v9 = vsel %vm79_vm0, 0.0, %v2033_v2  ;;  %v2043_v10 = vsel %vm127_vm1, %v2035_v3, 0.0  ;;  %v131_v27 = vrot.slane %v2047_v17, 1  ;;  %v2065_v28 = vld [vmem:[#allocation5 + $0x8] ss:$0 sm:$0xff]  ;;  %v133_v29 = vrot.slane %v2049_v18, 1 }
  0x2a   :  { %v177_v5 = vsub.s32 0, %v176_v4  ;;  %v197_v6 = vsub.s32 1, %v176_v4  ;;  %v232_v7 = vsub.s32 2, %v176_v4  ;;  %v304_v8 = vsub.s32 3, %v176_v4  ;;  %v2088_v41 = vld [vmem:[%s3863_s2] ss:$0 sm:$0xff] }
  0x2b   :  { %v324_v12 = vsub.s32 4, %v176_v4  ;;  %v360_v13 = vsub.s32 5, %v176_v4  ;;  %v426_v14 = vsub.s32 6, %v176_v4  ;;  %v446_v15 = vsub.s32 7, %v176_v4 }
  0x2c   :  { %v2051_v19 = vrot.slane %v43_v11, %v177_v5  ;;  %v2053_v20 = vrot.slane %v43_v11, %v197_v6  ;;  %v2055_v21 = vrot.slane %v43_v11, %v232_v7  ;;  %v2057_v22 = vrot.slane %v43_v11, %v304_v8 }
  0x2d   :  { %v134_v30 = vrot.slane %v2059_v23, 1  ;;  %v120_v33 = vsel %vm79_vm0, 0.0, %v82_v24  ;;  %v2074_v34 = vsel %vm79_vm0, 0.0, %v85_v25  ;;  %v132_v35 = vsel %vm127_vm1, %v130_v26, %v131_v27 }
  0x2e   :  { %v179_v31 = vmul.f32 %v2051_v19, %v2039_v9  ;;  %v199_v32 = vmul.f32 0.0, %v2053_v20  ;;  %v234_v36 = vmul.f32 %v2055_v21, %v2035_v3  ;;  %v306_v39 = vmul.f32 %v2057_v22, %v120_v33 }
  0x2f   :  { %v2080_v37 = vsel %vm127_vm1, %v133_v29, %v134_v30  ;;  %v2083_v40 = vrot.slane %v43_v11, %v324_v12  ;;  %v2090_v42 = vrot.slane %v43_v11, %v360_v13  ;;  %v2092_v43 = vrot.slane %v43_v11, %v426_v14  ;;  %v2135_v14 = vld [vmem:[#allocation2 + $0x28] sm:$0xff] }
  0x30   :  { %v214_v38 = vadd.f32 %v199_v32, %v179_v31  ;;  %v2094_v44 = vrot.slane %v43_v11, %v446_v15  ;;  %v484_v45 = vmul.f32 %v2065_v28, %v2080_v37  ;;  %v83_v48 = vrot.slane %v2047_v17, 7 }
  0x31   :  { %v326_v47 = vmul.f32 %v2083_v40, %v2045_v16  ;;  %v86_v49 = vrot.slane %v2059_v23, 7  ;;  %v362_v50 = vmul.f32 %v2090_v42, %v132_v35  ;;  %v428_v51 = vmul.f32 %v2092_v43, %v2074_v34 }
  0x32   :  { %v250_v46 = vadd.f32 %v234_v36, %v214_v38  ;;  %v448_v52 = vmul.f32 %v2094_v44, %v2049_v18  ;;  %v168_v53 = vsel %vm127_vm1, %v131_v27, 0.0  ;;  %v84_v56 = vsel %vm79_vm0, %v82_v24, %v83_v48 }
  0x33   :  { %v342_v55 = vadd.f32 %v326_v47, %v306_v39  ;;  %v2113_v57 = vsel %vm79_vm0, %v85_v25, %v86_v49  ;;  %v2116_v59 = vsel %vm127_vm1, %v134_v30, 0.0  ;;  %v180_v60 = vmul.f32 %v2051_v19, %v2033_v2 }
  0x34   :  { %v2109_v54 = vadd.f32 %v2088_v41, %v250_v46  ;;  %v464_v58 = vadd.f32 %v448_v52, %v428_v51  ;;  %v235_v61 = vmul.f32 %v2055_v21, %v2043_v10  ;;  %v307_v0 = vmul.f32 %v2057_v22, %v84_v56 }
  0x35   :  { %v378_v63 = vadd.f32 %v362_v50, %v342_v55  ;;  %v327_v1 = vmul.f32 %v2083_v40, %v2047_v17  ;;  %v363_v4 = vmul.f32 %v2090_v42, %v168_v53  ;;  %v215_v6 = vadd.f32 %v199_v32, %v180_v60 }
  0x36   :  { %v500_v5 = vadd.f32 %v484_v45, %v464_v58  ;;  %v429_v7 = vmul.f32 %v2092_v43, %v2113_v57  ;;  %v449_v8 = vmul.f32 %v2094_v44, %v2059_v23  ;;  %v485_v13 = vmul.f32 %v2065_v28, %v2116_v59 }
  0x37   :  { %v394_v11 = vadd.f32 %v378_v63, %v2109_v54  ;;  %v343_v12 = vadd.f32 %v327_v1, %v307_v0  ;;  %v88_v15 = vrot.slane %v2122_v62, 7  ;;  %v251_v24 = vadd.f32 %v235_v61, %v215_v6 }
  0x38   :  { %v465_v25 = vadd.f32 %v449_v8, %v429_v7  ;;  %v136_v26 = vrot.slane %v2122_v62, 1  ;;  %v137_v27 = vrot.slane %v2135_v14, 1  ;;  %v181_v32 = vmul.f32 %v2051_v19, %v120_v33  ;;  %v2177_v7 = vld [vmem:[#allocation2 + $0x30] sm:$0xff] }
  0x39   :  { %v516_v29 = vadd.f32 %v500_v5, %v394_v11  ;;  %v379_v30 = vadd.f32 %v363_v4, %v343_v12  ;;  %v2141_v31 = vsel %vm79_vm0, 0.0, %v88_v15  ;;  %v2145_v36 = vadd.f32 %v2088_v41, %v251_v24 }
  0x3a   :  { %v501_v38 = vadd.f32 %v485_v13, %v465_v25  ;;  %v2148_v39 = vsel %vm127_vm1, %v136_v26, %v137_v27  ;;  %v200_v45 = vmul.f32 %v2053_v20, %v2045_v16  ;;  %v236_v46 = vmul.f32 %v2055_v21, %v132_v35 }
  0x3b   :  { %532 = vst [vmem:[#allocation7] sm:$0xff] %v516_v29  ;;  %v308_v47 = vmul.f32 %v2057_v22, %v2074_v34  ;;  %v328_v48 = vmul.f32 %v2083_v40, %v2049_v18  ;;  %v364_v33 = vmul.f32 %v2090_v42, %v2080_v37  ;;  %v395_v49 = vadd.f32 %v379_v30, %v2145_v36 }
  0x3c   :  { %v216_v50 = vadd.f32 %v200_v45, %v181_v32  ;;  %v430_v51 = vmul.f32 %v2092_v43, %v2141_v31  ;;  %v450_v16 = vmul.f32 %v2094_v44, %v2122_v62  ;;  %v486_v35 = vmul.f32 %v2065_v28, %v2148_v39 }
  0x3d   :  { %v344_v52 = vadd.f32 %v328_v48, %v308_v47  ;;  %v89_v55 = vrot.slane %v2135_v14, 7  ;;  %v2168_v58 = vsel %vm127_vm1, %v137_v27, 0.0  ;;  %v517_v60 = vadd.f32 %v501_v38, %v395_v49  ;;  %v2192_v27 = vld [vmem:[#allocation2 + $0x38] sm:$0xff] }
  0x3e   :  { %v252_v61 = vadd.f32 %v236_v46, %v216_v50  ;;  %v466_v63 = vadd.f32 %v450_v16, %v430_v51  ;;  %v182_v0 = vmul.f32 %v2051_v19, %v84_v56  ;;  %v201_v5 = vmul.f32 %v2053_v20, %v2047_v17 }
  0x3f   :  { %v380_v1 = vadd.f32 %v364_v33, %v344_v52  ;;  %v2172_v4 = vsel %vm79_vm0, %v88_v15, %v89_v55  ;;  %v237_v6 = vmul.f32 %v2055_v21, %v168_v53  ;;  %533 = vst [vmem:[#allocation7 + $0x8] sm:$0xff] %v517_v60  ;;  %v309_v12 = vmul.f32 %v2057_v22, %v2113_v57 }
  0x40   :  { %v274_v8 = vadd.f32 %v2088_v41, %v252_v61  ;;  %v502_v11 = vadd.f32 %v486_v35, %v466_v63  ;;  %v329_v56 = vmul.f32 %v2083_v40, %v2059_v23  ;;  %v217_v13 = vadd.f32 %v201_v5, %v182_v0 }
  0x41   :  { %v365_v15 = vmul.f32 %v2090_v42, %v2116_v59  ;;  %v431_v17 = vmul.f32 %v2092_v43, %v2172_v4  ;;  %v451_v53 = vmul.f32 %v2094_v44, %v2135_v14  ;;  %v487_v26 = vmul.f32 %v2065_v28, %v2168_v58 }
  0x42   :  { %v396_v24 = vadd.f32 %v380_v1, %v274_v8  ;;  %v345_v25 = vadd.f32 %v329_v56, %v309_v12  ;;  %v91_v29 = vrot.slane %v2177_v7, 7  ;;  %v253_v30 = vadd.f32 %v237_v6, %v217_v13 }
  0x43   :  { %v467_v32 = vadd.f32 %v451_v53, %v431_v17  ;;  %v139_v38 = vrot.slane %v2177_v7, 1  ;;  %v140_v45 = vrot.slane %v2192_v27, 1  ;;  %v183_v33 = vmul.f32 %v2051_v19, %v2074_v34  ;;  %v2235_v53 = vld [vmem:[#allocation2 + $0x40] sm:$0xff] }
  0x44   :  { %v518_v46 = vadd.f32 %v502_v11, %v396_v24  ;;  %v381_v47 = vadd.f32 %v365_v15, %v345_v25  ;;  %v2198_v48 = vsel %vm79_vm0, 0.0, %v91_v29  ;;  %v275_v49 = vadd.f32 %v2088_v41, %v253_v30 }
  0x45   :  { %v503_v50 = vadd.f32 %v487_v26, %v467_v32  ;;  %v2204_v51 = vsel %vm127_vm1, %v139_v38, %v140_v45  ;;  %v202_v16 = vmul.f32 %v2053_v20, %v2049_v18  ;;  %v238_v52 = vmul.f32 %v2055_v21, %v2080_v37 }
  0x46   :  { %534 = vst [vmem:[#allocation7 + $0x10] sm:$0xff] %v518_v46  ;;  %v310_v35 = vmul.f32 %v2057_v22, %v2141_v31  ;;  %v330_v55 = vmul.f32 %v2083_v40, %v2122_v62  ;;  %v366_v34 = vmul.f32 %v2090_v42, %v2148_v39  ;;  %v397_v60 = vadd.f32 %v381_v47, %v275_v49  ;;  %v2250_v46 = vld [vmem:[#allocation2 + $0x48] sm:$0xff] }
  0x47   :  { %v218_v61 = vadd.f32 %v202_v16, %v183_v33  ;;  %v432_v63 = vmul.f32 %v2092_v43, %v2198_v48  ;;  %v452_v18 = vmul.f32 %v2094_v44, %v2177_v7  ;;  %v488_v37 = vmul.f32 %v2065_v28, %v2204_v51 }
  0x48   :  { %v346_v0 = vadd.f32 %v330_v55, %v310_v35  ;;  %v92_v1 = vrot.slane %v2192_v27, 7  ;;  %v2224_v5 = vsel %vm127_vm1, %v140_v45, 0.0  ;;  %v519_v6 = vadd.f32 %v503_v50, %v397_v60 }
  0x49   :  { %v254_v8 = vadd.f32 %v238_v52, %v218_v61  ;;  %v468_v11 = vadd.f32 %v452_v18, %v432_v63  ;;  %v184_v12 = vmul.f32 %v2051_v19, %v2113_v57  ;;  %v203_v15 = vmul.f32 %v2053_v20, %v2059_v23 }
  0x4a   :  { %v382_v56 = vadd.f32 %v366_v34, %v346_v0  ;;  %v2229_v13 = vsel %vm79_vm0, %v91_v29, %v92_v1  ;;  %v239_v17 = vmul.f32 %v2055_v21, %v2116_v59  ;;  %535 = vst [vmem:[#allocation7 + $0x18] sm:$0xff] %v519_v6  ;;  %v311_v26 = vmul.f32 %v2057_v22, %v2172_v4 }
  0x4b   :  { %v276_v24 = vadd.f32 %v2088_v41, %v254_v8  ;;  %v504_v25 = vadd.f32 %v488_v37, %v468_v11  ;;  %v331_v57 = vmul.f32 %v2083_v40, %v2135_v14  ;;  %v219_v29 = vadd.f32 %v203_v15, %v184_v12 }
  0x4c   :  { %v367_v30 = vmul.f32 %v2090_v42, %v2168_v58  ;;  %v433_v23 = vmul.f32 %v2092_v43, %v2229_v13  ;;  %v453_v59 = vmul.f32 %v2094_v44, %v2192_v27  ;;  %v489_v45 = vmul.f32 %v2065_v28, %v2224_v5 }
  0x4d   :  { %v398_v32 = vadd.f32 %v382_v56, %v276_v24  ;;  %v347_v38 = vadd.f32 %v331_v57, %v311_v26  ;;  %v94_v47 = vrot.slane %v2235_v53, 7  ;;  %v255_v33 = vadd.f32 %v239_v17, %v219_v29 }
  0x4e   :  { %v469_v49 = vadd.f32 %v453_v59, %v433_v23  ;;  %v142_v50 = vrot.slane %v2235_v53, 1  ;;  %v143_v16 = vrot.slane %v2250_v46, 1  ;;  %v185_v34 = vmul.f32 %v2051_v19, %v2141_v31  ;;  %v2293_v59 = vld [vmem:[#allocation2 + $0x50] sm:$0xff] }
  0x4f   :  { %v520_v52 = vadd.f32 %v504_v25, %v398_v32  ;;  %v383_v35 = vadd.f32 %v367_v30, %v347_v38  ;;  %v2256_v55 = vsel %vm79_vm0, 0.0, %v94_v47  ;;  %v277_v60 = vadd.f32 %v2088_v41, %v255_v33 }
  0x50   :  { %v505_v61 = vadd.f32 %v489_v45, %v469_v49  ;;  %v2262_v63 = vsel %vm127_vm1, %v142_v50, %v143_v16  ;;  %v204_v18 = vmul.f32 %v2053_v20, %v2122_v62  ;;  %v240_v0 = vmul.f32 %v2055_v21, %v2148_v39 }
  0x51   :  { %536 = vst [vmem:[#allocation7 + $0x20] sm:$0xff] %v520_v52  ;;  %v312_v37 = vmul.f32 %v2057_v22, %v2198_v48  ;;  %v332_v1 = vmul.f32 %v2083_v40, %v2177_v7  ;;  %v368_v31 = vmul.f32 %v2090_v42, %v2204_v51  ;;  %v399_v6 = vadd.f32 %v383_v35, %v277_v60  ;;  %v2308_v52 = vld [vmem:[#allocation2 + $0x58] sm:$0xff] }
  0x52   :  { %v220_v8 = vadd.f32 %v204_v18, %v185_v34  ;;  %v434_v11 = vmul.f32 %v2092_v43, %v2256_v55  ;;  %v454_v62 = vmul.f32 %v2094_v44, %v2235_v53  ;;  %v490_v39 = vmul.f32 %v2065_v28, %v2262_v63 }
  0x53   :  { %v348_v12 = vadd.f32 %v332_v1, %v312_v37  ;;  %v95_v56 = vrot.slane %v2250_v46, 7  ;;  %v2282_v15 = vsel %vm127_vm1, %v143_v16, 0.0  ;;  %v521_v17 = vadd.f32 %v505_v61, %v399_v6 }
  0x54   :  { %v256_v24 = vadd.f32 %v240_v0, %v220_v8  ;;  %v470_v25 = vadd.f32 %v454_v62, %v434_v11  ;;  %v186_v26 = vmul.f32 %v2051_v19, %v2172_v4  ;;  %v205_v30 = vmul.f32 %v2053_v20, %v2135_v14 }
  0x55   :  { %v384_v57 = vadd.f32 %v368_v31, %v348_v12  ;;  %v2287_v29 = vsel %vm79_vm0, %v94_v47, %v95_v56  ;;  %v241_v23 = vmul.f32 %v2055_v21, %v2168_v58  ;;  %537 = vst [vmem:[#allocation7 + $0x28] sm:$0xff] %v521_v17  ;;  %v313_v45 = vmul.f32 %v2057_v22, %v2229_v13 }
  0x56   :  { %v278_v32 = vadd.f32 %v2088_v41, %v256_v24  ;;  %v506_v38 = vadd.f32 %v490_v39, %v470_v25  ;;  %v333_v4 = vmul.f32 %v2083_v40, %v2192_v27  ;;  %v221_v47 = vadd.f32 %v205_v30, %v186_v26 }
  0x57   :  { %v369_v33 = vmul.f32 %v2090_v42, %v2224_v5  ;;  %v435_v14 = vmul.f32 %v2092_v43, %v2287_v29  ;;  %v455_v58 = vmul.f32 %v2094_v44, %v2250_v46  ;;  %v491_v16 = vmul.f32 %v2065_v28, %v2282_v15 }
  0x58   :  { %v400_v49 = vadd.f32 %v384_v57, %v278_v32  ;;  %v349_v50 = vadd.f32 %v333_v4, %v313_v45  ;;  %v97_v35 = vrot.slane %v2293_v59, 7  ;;  %v257_v34 = vadd.f32 %v241_v23, %v221_v47 }
  0x59   :  { %v471_v60 = vadd.f32 %v455_v58, %v435_v14  ;;  %v145_v61 = vrot.slane %v2293_v59, 1  ;;  %v146_v18 = vrot.slane %v2308_v52, 1  ;;  %v187_v31 = vmul.f32 %v2051_v19, %v2198_v48  ;;  %v2351_v58 = vld [vmem:[#allocation2 + $0x60] sm:$0xff] }
  0x5a   :  { %v522_v0 = vadd.f32 %v506_v38, %v400_v49  ;;  %v385_v37 = vadd.f32 %v369_v33, %v349_v50  ;;  %v2314_v1 = vsel %vm79_vm0, 0.0, %v97_v35  ;;  %v279_v6 = vadd.f32 %v2088_v41, %v257_v34 }
  0x5b   :  { %v507_v8 = vadd.f32 %v491_v16, %v471_v60  ;;  %v2320_v11 = vsel %vm127_vm1, %v145_v61, %v146_v18  ;;  %v206_v62 = vmul.f32 %v2053_v20, %v2177_v7  ;;  %v242_v12 = vmul.f32 %v2055_v21, %v2204_v51 }
  0x5c   :  { %538 = vst [vmem:[#allocation7 + $0x30] sm:$0xff] %v522_v0  ;;  %v314_v39 = vmul.f32 %v2057_v22, %v2256_v55  ;;  %v334_v56 = vmul.f32 %v2083_v40, %v2235_v53  ;;  %v370_v48 = vmul.f32 %v2090_v42, %v2262_v63  ;;  %v401_v17 = vadd.f32 %v385_v37, %v279_v6  ;;  %v2366_v0 = vld [vmem:[#allocation2 + $0x68] sm:$0xff] }
  0x5d   :  { %v222_v24 = vadd.f32 %v206_v62, %v187_v31  ;;  %v436_v25 = vmul.f32 %v2092_v43, %v2314_v1  ;;  %v456_v7 = vmul.f32 %v2094_v44, %v2293_v59  ;;  %v492_v51 = vmul.f32 %v2065_v28, %v2320_v11 }
  0x5e   :  { %v350_v26 = vadd.f32 %v334_v56, %v314_v39  ;;  %v98_v57 = vrot.slane %v2308_v52, 7  ;;  %v2340_v30 = vsel %vm127_vm1, %v146_v18, 0.0  ;;  %v523_v23 = vadd.f32 %v507_v8, %v401_v17 }
  0x5f   :  { %v258_v32 = vadd.f32 %v242_v12, %v222_v24  ;;  %v472_v38 = vadd.f32 %v456_v7, %v436_v25  ;;  %v188_v45 = vmul.f32 %v2051_v19, %v2229_v13  ;;  %v207_v33 = vmul.f32 %v2053_v20, %v2192_v27 }
  0x60   :  { %v386_v4 = vadd.f32 %v370_v48, %v350_v26  ;;  %v2345_v47 = vsel %vm79_vm0, %v97_v35, %v98_v57  ;;  %v243_v14 = vmul.f32 %v2055_v21, %v2224_v5  ;;  %539 = vst [vmem:[#allocation7 + $0x38] sm:$0xff] %v523_v23  ;;  %v315_v16 = vmul.f32 %v2057_v22, %v2287_v29 }
  0x61   :  { %v280_v49 = vadd.f32 %v2088_v41, %v258_v32  ;;  %v508_v50 = vadd.f32 %v492_v51, %v472_v38  ;;  %v335_v13 = vmul.f32 %v2083_v40, %v2250_v46  ;;  %v223_v35 = vadd.f32 %v207_v33, %v188_v45 }
  0x62   :  { %v371_v34 = vmul.f32 %v2090_v42, %v2282_v15  ;;  %v437_v27 = vmul.f32 %v2092_v43, %v2345_v47  ;;  %v457_v5 = vmul.f32 %v2094_v44, %v2308_v52  ;;  %v493_v18 = vmul.f32 %v2065_v28, %v2340_v30 }
  0x63   :  { %v402_v60 = vadd.f32 %v386_v4, %v280_v49  ;;  %v351_v61 = vadd.f32 %v335_v13, %v315_v16  ;;  %v100_v37 = vrot.slane %v2351_v58, 7  ;;  %v259_v31 = vadd.f32 %v243_v14, %v223_v35 }
  0x64   :  { %v473_v6 = vadd.f32 %v457_v5, %v437_v27  ;;  %v148_v8 = vrot.slane %v2351_v58, 1  ;;  %v149_v62 = vrot.slane %v2366_v0, 1  ;;  %v189_v48 = vmul.f32 %v2051_v19, %v2256_v55 }
  0x65   :  { %v524_v12 = vadd.f32 %v508_v50, %v402_v60  ;;  %v387_v39 = vadd.f32 %v371_v34, %v351_v61  ;;  %v2372_v56 = vsel %vm79_vm0, 0.0, %v100_v37  ;;  %v281_v17 = vadd.f32 %v2088_v41, %v259_v31  ;;  %v2420_v31 = vld [vmem:[#allocation2 + $0x70] sm:$0xff] }
  0x66   :  { %v509_v24 = vadd.f32 %v493_v18, %v473_v6  ;;  %v2378_v25 = vsel %vm127_vm1, %v148_v8, %v149_v62  ;;  %v208_v7 = vmul.f32 %v2053_v20, %v2235_v53  ;;  %v244_v26 = vmul.f32 %v2055_v21, %v2262_v63 }
  0x67   :  { %540 = vst [vmem:[#allocation7 + $0x40] sm:$0xff] %v524_v12  ;;  %v316_v51 = vmul.f32 %v2057_v22, %v2314_v1  ;;  %v336_v57 = vmul.f32 %v2083_v40, %v2293_v59  ;;  %v372_v55 = vmul.f32 %v2090_v42, %v2320_v11  ;;  %v403_v23 = vadd.f32 %v387_v39, %v281_v17 }
  0x68   :  { %v224_v32 = vadd.f32 %v208_v7, %v189_v48  ;;  %v438_v38 = vmul.f32 %v2092_v43, %v2372_v56  ;;  %v458_v53 = vmul.f32 %v2094_v44, %v2351_v58  ;;  %v494_v63 = vmul.f32 %v2065_v28, %v2378_v25 }
  0x69   :  { %v352_v45 = vadd.f32 %v336_v57, %v316_v51  ;;  %v101_v4 = vrot.slane %v2366_v0, 7  ;;  %v2398_v33 = vsel %vm127_vm1, %v149_v62, 0.0  ;;  %v525_v14 = vadd.f32 %v509_v24, %v403_v23  ;;  %v2430_v51 = vld [vmem:[#allocation2 + $0x78] sm:$0xff] }
  0x6a   :  { %v260_v49 = vadd.f32 %v244_v26, %v224_v32  ;;  %v474_v50 = vadd.f32 %v458_v53, %v438_v38  ;;  %v190_v16 = vmul.f32 %v2051_v19, %v2287_v29  ;;  %v209_v34 = vmul.f32 %v2053_v20, %v2250_v46 }
  0x6b   :  { %v388_v13 = vadd.f32 %v372_v55, %v352_v45  ;;  %v2403_v35 = vsel %vm79_vm0, %v100_v37, %v101_v4  ;;  %v245_v27 = vmul.f32 %v2055_v21, %v2282_v15  ;;  %541 = vst [vmem:[#allocation7 + $0x48] sm:$0xff] %v525_v14  ;;  %v317_v61 = vmul.f32 %v2057_v22, %v2345_v47 }
  0x6c   :  { %v282_v5 = vadd.f32 %v2088_v41, %v260_v49  ;;  %v510_v60 = vadd.f32 %v494_v63, %v474_v50  ;;  %v337_v29 = vmul.f32 %v2083_v40, %v2308_v52  ;;  %v225_v18 = vadd.f32 %v209_v34, %v190_v16 }
  0x6d   :  { %v373_v37 = vmul.f32 %v2090_v42, %v2340_v30  ;;  %v439_v46 = vmul.f32 %v2092_v43, %v2403_v35  ;;  %v459_v15 = vmul.f32 %v2094_v44, %v2366_v0  ;;  %v495_v62 = vmul.f32 %v2065_v28, %v2398_v33 }
  0x6e   :  { %v404_v6 = vadd.f32 %v388_v13, %v282_v5  ;;  %v353_v8 = vadd.f32 %v337_v29, %v317_v61  ;;  %v191_v12 = vmul.f32 %v2051_v19, %v2314_v1  ;;  %v261_v39 = vadd.f32 %v245_v27, %v225_v18 }
  0x6f   :  { %v475_v48 = vadd.f32 %v459_v15, %v439_v46  ;;  %v210_v17 = vmul.f32 %v2053_v20, %v2293_v59  ;;  %v246_v24 = vmul.f32 %v2055_v21, %v2320_v11  ;;  %v290_v57 = vrot.slane %v2420_v31, 7 }
  0x70   :  { %v526_v7 = vadd.f32 %v510_v60, %v404_v6  ;;  %v389_v26 = vadd.f32 %v373_v37, %v353_v8  ;;  %v296_v55 = vrot.slane %v2420_v31, 1  ;;  %v283_v23 = vadd.f32 %v2088_v41, %v261_v39 }
  0x71   :  { %v511_v32 = vadd.f32 %v495_v62, %v475_v48  ;;  %v226_v1 = vadd.f32 %v210_v17, %v191_v12  ;;  %v297_v38 = vrot.slane %v2430_v51, 1  ;;  %v2437_v59 = vsel %vm79_vm0, 0.0, %v290_v57 }
  0x72   :  { %542 = vst [vmem:[#allocation7 + $0x50] sm:$0xff] %v526_v7  ;;  %v318_v11 = vmul.f32 %v2057_v22, %v2372_v56  ;;  %v338_v53 = vmul.f32 %v2083_v40, %v2351_v58  ;;  %v374_v45 = vmul.f32 %v2090_v42, %v2378_v25  ;;  %v405_v63 = vadd.f32 %v389_v26, %v283_v23  ;;  %v2480_v7 = vld [vmem:[#allocation2 + $0x80] sm:$0xff] }
  0x73   :  { %v262_v4 = vadd.f32 %v246_v24, %v226_v1  ;;  %v2446_v14 = vsel %vm127_vm1, %v296_v55, %v297_v38  ;;  %v440_v49 = vmul.f32 %v2092_v43, %v2437_v59  ;;  %v460_v16 = vmul.f32 %v2094_v44, %v2420_v31 }
  0x74   :  { %v354_v50 = vadd.f32 %v338_v53, %v318_v11  ;;  %v496_v13 = vmul.f32 %v2065_v28, %v2446_v14  ;;  %v192_v34 = vmul.f32 %v2051_v19, %v2345_v47  ;;  %v527_v27 = vadd.f32 %v511_v32, %v405_v63  ;;  %v2491_v53 = vld [vmem:[#allocation2 + $0x88] sm:$0xff] }
  0x75   :  { %v284_v5 = vadd.f32 %v2088_v41, %v262_v4  ;;  %v211_v60 = vmul.f32 %v2053_v20, %v2308_v52  ;;  %v247_v61 = vmul.f32 %v2055_v21, %v2340_v30  ;;  %v476_v18 = vadd.f32 %v460_v16, %v440_v49 }
  0x76   :  { %v390_v29 = vadd.f32 %v374_v45, %v354_v50  ;;  %v291_v37 = vrot.slane %v2430_v51, 7  ;;  %v2463_v46 = vsel %vm127_vm1, %v297_v38, 0.0  ;;  %543 = vst [vmem:[#allocation7 + $0x58] sm:$0xff] %v527_v27  ;;  %v319_v47 = vmul.f32 %v2057_v22, %v2403_v35 }
  0x77   :  { %v227_v15 = vadd.f32 %v211_v60, %v192_v34  ;;  %v339_v6 = vmul.f32 %v2083_v40, %v2366_v0  ;;  %v375_v52 = vmul.f32 %v2090_v42, %v2398_v33  ;;  %v512_v30 = vadd.f32 %v496_v13, %v476_v18 }
  0x78   :  { %v406_v8 = vadd.f32 %v390_v29, %v284_v5  ;;  %v2472_v62 = vsel %vm79_vm0, %v290_v57, %v291_v37  ;;  %v461_v12 = vmul.f32 %v2094_v44, %v2430_v51  ;;  %v497_v24 = vmul.f32 %v2065_v28, %v2463_v46 }
  0x79   :  { %v263_v39 = vadd.f32 %v247_v61, %v227_v15  ;;  %v355_v48 = vadd.f32 %v339_v6, %v319_v47  ;;  %v441_v17 = vmul.f32 %v2092_v43, %v2472_v62  ;;  %v193_v55 = vmul.f32 %v2051_v19, %v2372_v56 }
  0x7a   :  { %v528_v26 = vadd.f32 %v512_v30, %v406_v8  ;;  %v212_v57 = vmul.f32 %v2053_v20, %v2351_v58  ;;  %v248_v23 = vmul.f32 %v2055_v21, %v2378_v25  ;;  %v320_v11 = vmul.f32 %v2057_v22, %v2437_v59  ;;  %v2523_v30 = vld [vmem:[#allocation2 + $0x90] sm:$0xff] }
  0x7b   :  { %v285_v32 = vadd.f32 %v2088_v41, %v263_v39  ;;  %v391_v1 = vadd.f32 %v375_v52, %v355_v48  ;;  %v477_v38 = vadd.f32 %v461_v12, %v441_v17  ;;  %v340_v56 = vmul.f32 %v2083_v40, %v2420_v31 }
  0x7c   :  { %544 = vst [vmem:[#allocation7 + $0x60] sm:$0xff] %v528_v26  ;;  %v228_v45 = vadd.f32 %v212_v57, %v193_v55  ;;  %v376_v58 = vmul.f32 %v2090_v42, %v2446_v14  ;;  %v412_v63 = vrot.slane %v2480_v7, 7  ;;  %v418_v49 = vrot.slane %v2480_v7, 1 }
  0x7d   :  { %v407_v25 = vadd.f32 %v391_v1, %v285_v32  ;;  %v513_v4 = vadd.f32 %v497_v24, %v477_v38  ;;  %v419_v50 = vrot.slane %v2491_v53, 1  ;;  %v356_v13 = vadd.f32 %v340_v56, %v320_v11 }
  0x7e   :  { %v264_v16 = vadd.f32 %v248_v23, %v228_v45  ;;  %v2501_v34 = vsel %vm79_vm0, 0.0, %v412_v63  ;;  %v462_v27 = vmul.f32 %v2094_v44, %v2480_v7  ;;  %v194_v29 = vmul.f32 %v2051_v19, %v2403_v35  ;;  %v2541_v45 = vld [vmem:[#allocation2 + $0x98] sm:$0xff] }
  0x7f   :  { %v529_v5 = vadd.f32 %v513_v4, %v407_v25  ;;  %v2506_v60 = vsel %vm127_vm1, %v418_v49, %v419_v50  ;;  %v442_v61 = vmul.f32 %v2092_v43, %v2501_v34  ;;  %v392_v37 = vadd.f32 %v376_v58, %v356_v13 }
  0x80   :  { %v286_v18 = vadd.f32 %v2088_v41, %v264_v16  ;;  %v498_v15 = vmul.f32 %v2065_v28, %v2506_v60  ;;  %v213_v47 = vmul.f32 %v2053_v20, %v2366_v0  ;;  %v249_v52 = vmul.f32 %v2055_v21, %v2398_v33 }
  0x81   :  { %545 = vst [vmem:[#allocation7 + $0x68] sm:$0xff] %v529_v5  ;;  %v478_v6 = vadd.f32 %v462_v27, %v442_v61  ;;  %v321_v8 = vmul.f32 %v2057_v22, %v2472_v62  ;;  %v341_v35 = vmul.f32 %v2083_v40, %v2430_v51  ;;  %v377_v48 = vmul.f32 %v2090_v42, %v2463_v46 }
  0x82   :  { %v408_v12 = vadd.f32 %v392_v37, %v286_v18  ;;  %v229_v39 = vadd.f32 %v213_v47, %v194_v29  ;;  %v413_v0 = vrot.slane %v2491_v53, 7  ;;  %v2529_v26 = vsel %vm127_vm1, %v419_v50, 0.0 }
  0x83   :  { %v514_v17 = vadd.f32 %v498_v15, %v478_v6  ;;  %v357_v24 = vadd.f32 %v341_v35, %v321_v8  ;;  %v463_v33 = vmul.f32 %v2094_v44, %v2491_v53  ;;  %v499_v23 = vmul.f32 %v2065_v28, %v2529_v26 }
  0x84   :  { %v265_v55 = vadd.f32 %v249_v52, %v229_v39  ;;  %v2534_v57 = vsel %vm79_vm0, %v412_v63, %v413_v0  ;;  %v589_v32 = vrot.slane %v2523_v30, 7  ;;  %v637_v56 = vrot.slane %v2523_v30, 1 }
  0x85   :  { %v530_v1 = vadd.f32 %v514_v17, %v408_v12  ;;  %v393_v38 = vadd.f32 %v377_v48, %v357_v24  ;;  %v443_v11 = vmul.f32 %v2092_v43, %v2534_v57  ;;  %v638_v63 = vrot.slane %v2541_v45, 1  ;;  %v2583_v24 = vld [vmem:[#allocation2 + $0xa0] sm:$0xff] }
  0x86   :  { %v287_v58 = vadd.f32 %v2088_v41, %v265_v55  ;;  %v2546_v25 = vsel %vm79_vm0, 0.0, %v589_v32  ;;  %v679_v4 = vmul.f32 %v2437_v59, %v2051_v19  ;;  %v695_v50 = vmul.f32 %v2053_v20, %v2420_v31 }
  0x87   :  { %546 = vst [vmem:[#allocation7 + $0x70] sm:$0xff] %v530_v1  ;;  %v479_v49 = vadd.f32 %v463_v33, %v443_v11  ;;  %v727_v16 = vmul.f32 %v2446_v14, %v2055_v21  ;;  %v789_v13 = vmul.f32 %v2501_v34, %v2057_v22  ;;  %v2558_v5 = vsel %vm127_vm1, %v637_v56, %v638_v63 }
  0x88   :  { %v409_v27 = vadd.f32 %v393_v38, %v287_v58  ;;  %v805_v61 = vmul.f32 %v2083_v40, %v2480_v7  ;;  %v837_v59 = vmul.f32 %v2506_v60, %v2090_v42  ;;  %v711_v18 = vadd.f32 %v695_v50, %v679_v4  ;;  %v2598_v58 = vld [vmem:[#allocation2 + $0xa8] sm:$0xff] }
  0x89   :  { %v515_v29 = vadd.f32 %v499_v23, %v479_v49  ;;  %v885_v31 = vmul.f32 %v2546_v25, %v2092_v43  ;;  %v901_v14 = vmul.f32 %v2523_v30, %v2094_v44  ;;  %v932_v15 = vmul.f32 %v2065_v28, %v2558_v5 }
  0x8a   :  { %v821_v37 = vadd.f32 %v805_v61, %v789_v13  ;;  %v590_v47 = vrot.slane %v2541_v45, 7  ;;  %v2572_v6 = vsel %vm127_vm1, %v638_v63, 0.0  ;;  %v743_v8 = vadd.f32 %v727_v16, %v711_v18 }
  0x8b   :  { %v531_v52 = vadd.f32 %v515_v29, %v409_v27  ;;  %v916_v35 = vadd.f32 %v901_v14, %v885_v31  ;;  %v680_v12 = vmul.f32 %v2472_v62, %v2051_v19  ;;  %v696_v0 = vmul.f32 %v2053_v20, %v2430_v51 }
  0x8c   :  { %v853_v39 = vadd.f32 %v837_v59, %v821_v37  ;;  %v2577_v48 = vsel %vm79_vm0, %v589_v32, %v590_v47  ;;  %v728_v17 = vmul.f32 %v2463_v46, %v2055_v21  ;;  %v759_v33 = vadd.f32 %v2088_v41, %v743_v8 }
  0x8d   :  { %547 = vst [vmem:[#allocation7 + $0x78] sm:$0xff] %v531_v52  ;;  %v948_v55 = vadd.f32 %v932_v15, %v916_v35  ;;  %v790_v23 = vmul.f32 %v2534_v57, %v2057_v22  ;;  %v806_v62 = vmul.f32 %v2083_v40, %v2491_v53  ;;  %v712_v32 = vadd.f32 %v696_v0, %v680_v12 }
  0x8e   :  { %v838_v1 = vmul.f32 %v2529_v26, %v2090_v42  ;;  %v886_v51 = vmul.f32 %v2577_v48, %v2092_v43  ;;  %v902_v46 = vmul.f32 %v2541_v45, %v2094_v44  ;;  %v869_v38 = vadd.f32 %v853_v39, %v759_v33 }
  0x8f   :  { %v822_v11 = vadd.f32 %v806_v62, %v790_v23  ;;  %v933_v56 = vmul.f32 %v2065_v28, %v2572_v6  ;;  %v592_v63 = vrot.slane %v2583_v24, 7  ;;  %v744_v4 = vadd.f32 %v728_v17, %v712_v32 }
  0x90   :  { %v917_v49 = vadd.f32 %v902_v46, %v886_v51  ;;  %v640_v50 = vrot.slane %v2583_v24, 1  ;;  %v641_v16 = vrot.slane %v2598_v58, 1  ;;  %v964_v13 = vadd.f32 %v948_v55, %v869_v38  ;;  %v2641_v46 = vld [vmem:[#allocation2 + $0xb0] sm:$0xff] }
  0x91   :  { %v854_v27 = vadd.f32 %v838_v1, %v822_v11  ;;  %v2604_v61 = vsel %vm79_vm0, 0.0, %v592_v63  ;;  %v681_v59 = vmul.f32 %v2501_v34, %v2051_v19  ;;  %v760_v29 = vadd.f32 %v2088_v41, %v744_v4 }
  0x92   :  { %v949_v18 = vadd.f32 %v933_v56, %v917_v49  ;;  %v2610_v31 = vsel %vm127_vm1, %v640_v50, %v641_v16  ;;  %v697_v14 = vmul.f32 %v2053_v20, %v2480_v7  ;;  %981 = vst [vmem:[#allocation7 + $0x80] sm:$0xff] %v964_v13  ;;  %v729_v37 = vmul.f32 %v2506_v60, %v2055_v21  ;;  %v2656_v13 = vld [vmem:[#allocation2 + $0xb8] sm:$0xff] }
  0x93   :  { %v791_v15 = vmul.f32 %v2546_v25, %v2057_v22  ;;  %v807_v47 = vmul.f32 %v2523_v30, %v2083_v40  ;;  %v839_v34 = vmul.f32 %v2558_v5, %v2090_v42  ;;  %v870_v52 = vadd.f32 %v854_v27, %v760_v29 }
  0x94   :  { %v713_v8 = vadd.f32 %v697_v14, %v681_v59  ;;  %v887_v35 = vmul.f32 %v2604_v61, %v2092_v43  ;;  %v903_v7 = vmul.f32 %v2583_v24, %v2094_v44  ;;  %v934_v60 = vmul.f32 %v2065_v28, %v2610_v31 }
  0x95   :  { %v823_v12 = vadd.f32 %v807_v47, %v791_v15  ;;  %v593_v39 = vrot.slane %v2598_v58, 7  ;;  %v2630_v0 = vsel %vm127_vm1, %v641_v16, 0.0  ;;  %v965_v17 = vadd.f32 %v949_v18, %v870_v52 }
  0x96   :  { %v745_v33 = vadd.f32 %v729_v37, %v713_v8  ;;  %v918_v55 = vadd.f32 %v903_v7, %v887_v35  ;;  %v682_v23 = vmul.f32 %v2534_v57, %v2051_v19  ;;  %v698_v1 = vmul.f32 %v2053_v20, %v2491_v53 }
  0x97   :  { %v855_v62 = vadd.f32 %v839_v34, %v823_v12  ;;  %v2635_v32 = vsel %vm79_vm0, %v592_v63, %v593_v39  ;;  %v730_v51 = vmul.f32 %v2529_v26, %v2055_v21  ;;  %982 = vst [vmem:[#allocation7 + $0x88] sm:$0xff] %v965_v17  ;;  %v792_v56 = vmul.f32 %v2577_v48, %v2057_v22 }
  0x98   :  { %v761_v38 = vadd.f32 %v2088_v41, %v745_v33  ;;  %v950_v11 = vadd.f32 %v934_v60, %v918_v55  ;;  %v808_v57 = vmul.f32 %v2541_v45, %v2083_v40  ;;  %v714_v63 = vadd.f32 %v698_v1, %v682_v23 }
  0x99   :  { %v840_v4 = vmul.f32 %v2572_v6, %v2090_v42  ;;  %v888_v53 = vmul.f32 %v2635_v32, %v2092_v43  ;;  %v904_v26 = vmul.f32 %v2598_v58, %v2094_v44  ;;  %v935_v16 = vmul.f32 %v2065_v28, %v2630_v0 }
  0x9a   :  { %v871_v49 = vadd.f32 %v855_v62, %v761_v38  ;;  %v824_v50 = vadd.f32 %v808_v57, %v792_v56  ;;  %v595_v27 = vrot.slane %v2641_v46, 7  ;;  %v746_v59 = vadd.f32 %v730_v51, %v714_v63 }
  0x9b   :  { %v919_v29 = vadd.f32 %v904_v26, %v888_v53  ;;  %v643_v18 = vrot.slane %v2641_v46, 1  ;;  %v644_v14 = vrot.slane %v2656_v13, 1  ;;  %v683_v34 = vmul.f32 %v2546_v25, %v2051_v19  ;;  %v2699_v53 = vld [vmem:[#allocation2 + $0xc0] sm:$0xff] }
  0x9c   :  { %v966_v37 = vadd.f32 %v950_v11, %v871_v49  ;;  %v856_v15 = vadd.f32 %v840_v4, %v824_v50  ;;  %v2662_v47 = vsel %vm79_vm0, 0.0, %v595_v27  ;;  %v762_v52 = vadd.f32 %v2088_v41, %v746_v59 }
  0x9d   :  { %v951_v8 = vadd.f32 %v935_v16, %v919_v29  ;;  %v2668_v35 = vsel %vm127_vm1, %v643_v18, %v644_v14  ;;  %v699_v7 = vmul.f32 %v2523_v30, %v2053_v20  ;;  %v731_v12 = vmul.f32 %v2558_v5, %v2055_v21 }
  0x9e   :  { %983 = vst [vmem:[#allocation7 + $0x90] sm:$0xff] %v966_v37  ;;  %v793_v60 = vmul.f32 %v2604_v61, %v2057_v22  ;;  %v809_v39 = vmul.f32 %v2583_v24, %v2083_v40  ;;  %v841_v25 = vmul.f32 %v2610_v31, %v2090_v42  ;;  %v872_v17 = vadd.f32 %v856_v15, %v762_v52 }
  0x9f   :  { %v715_v33 = vadd.f32 %v699_v7, %v683_v34  ;;  %v889_v55 = vmul.f32 %v2662_v47, %v2092_v43  ;;  %v905_v30 = vmul.f32 %v2641_v46, %v2094_v44  ;;  %v936_v5 = vmul.f32 %v2065_v28, %v2668_v35 }
  0xa0   :  { %v825_v23 = vadd.f32 %v809_v39, %v793_v60  ;;  %v596_v62 = vrot.slane %v2656_v13, 7  ;;  %v2688_v1 = vsel %vm127_vm1, %v644_v14, 0.0  ;;  %v967_v51 = vadd.f32 %v951_v8, %v872_v17  ;;  %v2716_v14 = vld [vmem:[#allocation2 + $0xc8] sm:$0xff] }
  0xa1   :  { %v747_v38 = vadd.f32 %v731_v12, %v715_v33  ;;  %v920_v11 = vadd.f32 %v905_v30, %v889_v55  ;;  %v684_v56 = vmul.f32 %v2577_v48, %v2051_v19  ;;  %v700_v4 = vmul.f32 %v2541_v45, %v2053_v20 }
  0xa2   :  { %v857_v57 = vadd.f32 %v841_v25, %v825_v23  ;;  %v2693_v63 = vsel %vm79_vm0, %v595_v27, %v596_v62  ;;  %v732_v28 = vmul.f32 %v2572_v6, %v2055_v21  ;;  %984 = vst [vmem:[#allocation7 + $0x98] sm:$0xff] %v967_v51  ;;  %v794_v50 = vmul.f32 %v2635_v32, %v2057_v22  ;;  %v2729_v25 = vld [vmem:[%s3863_s2] ss:$0 sm:$0xff] }
  0xa3   :  { %v763_v26 = vadd.f32 %v2088_v41, %v747_v38  ;;  %v952_v49 = vadd.f32 %v936_v5, %v920_v11  ;;  %v810_v48 = vmul.f32 %v2598_v58, %v2083_v40  ;;  %v716_v16 = vadd.f32 %v700_v4, %v684_v56  ;;  %v2712_v41 = vld [vmem:[#allocation5 + $0x8] ss:$0 sm:$0xff] }
  0xa4   :  { %v842_v27 = vmul.f32 %v2630_v0, %v2090_v42  ;;  %v890_v45 = vmul.f32 %v2693_v63, %v2092_v43  ;;  %v906_v6 = vmul.f32 %v2656_v13, %v2094_v44  ;;  %v937_v18 = vmul.f32 %v2712_v41, %v2688_v1 }
  0xa5   :  { %v873_v59 = vadd.f32 %v857_v57, %v763_v26  ;;  %v826_v29 = vadd.f32 %v810_v48, %v794_v50  ;;  %v598_v37 = vrot.slane %v2699_v53, 7  ;;  %v748_v15 = vadd.f32 %v732_v28, %v716_v16 }
  0xa6   :  { %v921_v34 = vadd.f32 %v906_v6, %v890_v45  ;;  %v646_v52 = vrot.slane %v2699_v53, 1  ;;  %v647_v8 = vrot.slane %v2716_v14, 1  ;;  %v685_v39 = vmul.f32 %v2604_v61, %v2051_v19  ;;  %v2764_v6 = vld [vmem:[#allocation2 + $0xd0] sm:$0xff] }
  0xa7   :  { %v968_v7 = vadd.f32 %v952_v49, %v873_v59  ;;  %v858_v12 = vadd.f32 %v842_v27, %v826_v29  ;;  %v2722_v60 = vsel %vm79_vm0, 0.0, %v598_v37  ;;  %v764_v17 = vadd.f32 %v2729_v25, %v748_v15 }
  0xa8   :  { %v953_v33 = vadd.f32 %v937_v18, %v921_v34  ;;  %v2733_v55 = vsel %vm127_vm1, %v646_v52, %v647_v8  ;;  %v701_v30 = vmul.f32 %v2583_v24, %v2053_v20  ;;  %v733_v23 = vmul.f32 %v2610_v31, %v2055_v21 }
  0xa9   :  { %985 = vst [vmem:[#allocation7 + $0xa0] sm:$0xff] %v968_v7  ;;  %v795_v61 = vmul.f32 %v2662_v47, %v2057_v22  ;;  %v811_v5 = vmul.f32 %v2641_v46, %v2083_v40  ;;  %v843_v62 = vmul.f32 %v2668_v35, %v2090_v42  ;;  %v874_v51 = vadd.f32 %v858_v12, %v764_v17  ;;  %v2779_v7 = vld [vmem:[#allocation2 + $0xd8] sm:$0xff] }
  0xaa   :  { %v717_v38 = vadd.f32 %v701_v30, %v685_v39  ;;  %v891_v11 = vmul.f32 %v2722_v60, %v2092_v43  ;;  %v907_v24 = vmul.f32 %v2699_v53, %v2094_v44  ;;  %v938_v31 = vmul.f32 %v2712_v41, %v2733_v55 }
  0xab   :  { %v827_v56 = vadd.f32 %v811_v5, %v795_v61  ;;  %v599_v57 = vrot.slane %v2716_v14, 7  ;;  %v2753_v4 = vsel %vm127_vm1, %v647_v8, 0.0  ;;  %v969_v28 = vadd.f32 %v953_v33, %v874_v51 }
  0xac   :  { %v749_v26 = vadd.f32 %v733_v23, %v717_v38  ;;  %v922_v49 = vadd.f32 %v907_v24, %v891_v11  ;;  %v686_v50 = vmul.f32 %v2635_v32, %v2051_v19  ;;  %v702_v27 = vmul.f32 %v2598_v58, %v2053_v20 }
  0xad   :  { %v859_v48 = vadd.f32 %v843_v62, %v827_v56  ;;  %v2758_v16 = vsel %vm79_vm0, %v598_v37, %v599_v57  ;;  %v734_v45 = vmul.f32 %v2630_v0, %v2055_v21  ;;  %986 = vst [vmem:[#allocation7 + $0xa8] sm:$0xff] %v969_v28  ;;  %v796_v18 = vmul.f32 %v2693_v63, %v2057_v22 }
  0xae   :  { %v765_v59 = vadd.f32 %v2729_v25, %v749_v26  ;;  %v954_v29 = vadd.f32 %v938_v31, %v922_v49  ;;  %v812_v32 = vmul.f32 %v2656_v13, %v2083_v40  ;;  %v718_v37 = vadd.f32 %v702_v27, %v686_v50 }
  0xaf   :  { %v844_v15 = vmul.f32 %v2688_v1, %v2090_v42  ;;  %v892_v58 = vmul.f32 %v2758_v16, %v2092_v43  ;;  %v908_v0 = vmul.f32 %v2716_v14, %v2094_v44  ;;  %v939_v8 = vmul.f32 %v2712_v41, %v2753_v4 }
  0xb0   :  { %v875_v34 = vadd.f32 %v859_v48, %v765_v59  ;;  %v828_v52 = vadd.f32 %v812_v32, %v796_v18  ;;  %v601_v12 = vrot.slane %v2764_v6, 7  ;;  %v750_v39 = vadd.f32 %v734_v45, %v718_v37 }
  0xb1   :  { %v923_v17 = vadd.f32 %v908_v0, %v892_v58  ;;  %v649_v33 = vrot.slane %v2764_v6, 1  ;;  %v650_v30 = vrot.slane %v2779_v7, 1  ;;  %v687_v62 = vmul.f32 %v2662_v47, %v2051_v19  ;;  %v2822_v0 = vld [vmem:[#allocation2 + $0xe0] sm:$0xff] }
  0xb2   :  { %v970_v23 = vadd.f32 %v954_v29, %v875_v34  ;;  %v860_v61 = vadd.f32 %v844_v15, %v828_v52  ;;  %v2785_v5 = vsel %vm79_vm0, 0.0, %v601_v12  ;;  %v766_v51 = vadd.f32 %v2729_v25, %v750_v39 }
  0xb3   :  { %v955_v38 = vadd.f32 %v939_v8, %v923_v17  ;;  %v2791_v11 = vsel %vm127_vm1, %v649_v33, %v650_v30  ;;  %v703_v24 = vmul.f32 %v2641_v46, %v2053_v20  ;;  %v735_v56 = vmul.f32 %v2668_v35, %v2055_v21 }
  0xb4   :  { %987 = vst [vmem:[#allocation7 + $0xb0] sm:$0xff] %v970_v23  ;;  %v797_v31 = vmul.f32 %v2722_v60, %v2057_v22  ;;  %v813_v57 = vmul.f32 %v2699_v53, %v2083_v40  ;;  %v845_v47 = vmul.f32 %v2733_v55, %v2090_v42  ;;  %v876_v28 = vadd.f32 %v860_v61, %v766_v51  ;;  %v2837_v23 = vld [vmem:[#allocation2 + $0xe8] sm:$0xff] }
  0xb5   :  { %v719_v26 = vadd.f32 %v703_v24, %v687_v62  ;;  %v893_v49 = vmul.f32 %v2785_v5, %v2092_v43  ;;  %v909_v46 = vmul.f32 %v2764_v6, %v2094_v44  ;;  %v940_v35 = vmul.f32 %v2712_v41, %v2791_v11 }
  0xb6   :  { %v829_v50 = vadd.f32 %v813_v57, %v797_v31  ;;  %v602_v48 = vrot.slane %v2779_v7, 7  ;;  %v2811_v27 = vsel %vm127_vm1, %v650_v30, 0.0  ;;  %v971_v45 = vadd.f32 %v955_v38, %v876_v28 }
  0xb7   :  { %v751_v59 = vadd.f32 %v735_v56, %v719_v26  ;;  %v924_v29 = vadd.f32 %v909_v46, %v893_v49  ;;  %v688_v18 = vmul.f32 %v2693_v63, %v2051_v19  ;;  %v704_v15 = vmul.f32 %v2656_v13, %v2053_v20 }
  0xb8   :  { %v861_v32 = vadd.f32 %v845_v47, %v829_v50  ;;  %v2816_v37 = vsel %vm79_vm0, %v601_v12, %v602_v48  ;;  %v736_v58 = vmul.f32 %v2688_v1, %v2055_v21  ;;  %988 = vst [vmem:[#allocation7 + $0xb8] sm:$0xff] %v971_v45  ;;  %v798_v8 = vmul.f32 %v2758_v16, %v2057_v22 }
  0xb9   :  { %v767_v34 = vadd.f32 %v2729_v25, %v751_v59  ;;  %v956_v52 = vadd.f32 %v940_v35, %v924_v29  ;;  %v814_v63 = vmul.f32 %v2716_v14, %v2083_v40  ;;  %v720_v12 = vadd.f32 %v704_v15, %v688_v18 }
  0xba   :  { %v846_v39 = vmul.f32 %v2753_v4, %v2090_v42  ;;  %v894_v13 = vmul.f32 %v2816_v37, %v2092_v43  ;;  %v910_v1 = vmul.f32 %v2779_v7, %v2094_v44  ;;  %v941_v30 = vmul.f32 %v2712_v41, %v2811_v27 }
  0xbb   :  { %v877_v17 = vadd.f32 %v861_v32, %v767_v34  ;;  %v830_v33 = vadd.f32 %v814_v63, %v798_v8  ;;  %v604_v61 = vrot.slane %v2822_v0, 7  ;;  %v752_v62 = vadd.f32 %v736_v58, %v720_v12 }
  0xbc   :  { %v925_v51 = vadd.f32 %v910_v1, %v894_v13  ;;  %v652_v38 = vrot.slane %v2822_v0, 1  ;;  %v653_v24 = vrot.slane %v2837_v23, 1  ;;  %v689_v47 = vmul.f32 %v2722_v60, %v2051_v19 }
  0xbd   :  { %v972_v56 = vadd.f32 %v956_v52, %v877_v17  ;;  %v862_v31 = vadd.f32 %v846_v39, %v830_v33  ;;  %v2843_v57 = vsel %vm79_vm0, 0.0, %v604_v61  ;;  %v768_v28 = vadd.f32 %v2729_v25, %v752_v62  ;;  %v565_v62 = vld [vmem:[#allocation2 + $0xf0] sm:$0xff] }
  0xbe   :  { %v957_v26 = vadd.f32 %v941_v30, %v925_v51  ;;  %v2849_v49 = vsel %vm127_vm1, %v652_v38, %v653_v24  ;;  %v705_v46 = vmul.f32 %v2699_v53, %v2053_v20  ;;  %v737_v50 = vmul.f32 %v2733_v55, %v2055_v21 }
  0xbf   :  { %989 = vst [vmem:[#allocation7 + $0xc0] sm:$0xff] %v972_v56  ;;  %v799_v35 = vmul.f32 %v2785_v5, %v2057_v22  ;;  %v815_v48 = vmul.f32 %v2764_v6, %v2083_v40  ;;  %v847_v60 = vmul.f32 %v2791_v11, %v2090_v42  ;;  %v878_v45 = vadd.f32 %v862_v31, %v768_v28 }
  0xc0   :  { %v721_v59 = vadd.f32 %v705_v46, %v689_v47  ;;  %v895_v29 = vmul.f32 %v2843_v57, %v2092_v43  ;;  %v911_v53 = vmul.f32 %v2822_v0, %v2094_v44  ;;  %v942_v55 = vmul.f32 %v2712_v41, %v2849_v49 }
  0xc1   :  { %v831_v18 = vadd.f32 %v815_v48, %v799_v35  ;;  %v605_v32 = vrot.slane %v2837_v23, 7  ;;  %v2869_v15 = vsel %vm127_vm1, %v653_v24, 0.0  ;;  %v973_v58 = vadd.f32 %v957_v26, %v878_v45  ;;  %v2899_v35 = vld [vmem:[#allocation2 + $0xf8] sm:$0xff] }
  0xc2   :  { %v753_v34 = vadd.f32 %v737_v50, %v721_v59  ;;  %v926_v52 = vadd.f32 %v911_v53, %v895_v29  ;;  %v690_v8 = vmul.f32 %v2758_v16, %v2051_v19  ;;  %v706_v39 = vmul.f32 %v2716_v14, %v2053_v20 }
  0xc3   :  { %v863_v63 = vadd.f32 %v847_v60, %v831_v18  ;;  %v2874_v12 = vsel %vm79_vm0, %v604_v61, %v605_v32  ;;  %v738_v13 = vmul.f32 %v2753_v4, %v2055_v21  ;;  %990 = vst [vmem:[#allocation7 + $0xc8] sm:$0xff] %v973_v58  ;;  %v800_v33 = vmul.f32 %v2816_v37, %v2057_v22 }
  0xc4   :  { %v769_v1 = vadd.f32 %v2729_v25, %v753_v34  ;;  %v958_v17 = vadd.f32 %v942_v55, %v926_v52  ;;  %v816_v16 = vmul.f32 %v2779_v7, %v2083_v40  ;;  %v722_v30 = vadd.f32 %v706_v39, %v690_v8 }
  0xc5   :  { %v848_v61 = vmul.f32 %v2811_v27, %v2090_v42  ;;  %v896_v14 = vmul.f32 %v2874_v12, %v2092_v43  ;;  %v912_v4 = vmul.f32 %v2837_v23, %v2094_v44  ;;  %v943_v24 = vmul.f32 %v2712_v41, %v2869_v15 }
  0xc6   :  { %v879_v51 = vadd.f32 %v863_v63, %v769_v1  ;;  %v832_v38 = vadd.f32 %v816_v16, %v800_v33  ;;  %v691_v56 = vmul.f32 %v2785_v5, %v2051_v19  ;;  %v754_v31 = vadd.f32 %v738_v13, %v722_v30 }
  0xc7   :  { %v927_v47 = vadd.f32 %v912_v4, %v896_v14  ;;  %v707_v28 = vmul.f32 %v2764_v6, %v2053_v20  ;;  %v739_v26 = vmul.f32 %v2791_v11, %v2055_v21  ;;  %v777_v48 = vrot.slane %v565_v62, 7 }
  0xc8   :  { %v974_v46 = vadd.f32 %v958_v17, %v879_v51  ;;  %v864_v50 = vadd.f32 %v848_v61, %v832_v38  ;;  %v783_v60 = vrot.slane %v565_v62, 1  ;;  %v770_v45 = vadd.f32 %v2729_v25, %v754_v31 }
  0xc9   :  { %v959_v59 = vadd.f32 %v943_v24, %v927_v47  ;;  %v723_v29 = vadd.f32 %v707_v28, %v691_v56  ;;  %v784_v5 = vrot.slane %v2899_v35, 1  ;;  %v782_v53 = vsel %vm79_vm0, 0.0, %v777_v48 }
  0xca   :  { %991 = vst [vmem:[#allocation7 + $0xd0] sm:$0xff] %v974_v46  ;;  %v801_v6 = vmul.f32 %v2843_v57, %v2057_v22  ;;  %v817_v11 = vmul.f32 %v2822_v0, %v2083_v40  ;;  %v849_v18 = vmul.f32 %v2849_v49, %v2090_v42  ;;  %v880_v55 = vadd.f32 %v864_v50, %v770_v45 }
  0xcb   :  { %v755_v32 = vadd.f32 %v739_v26, %v723_v29  ;;  %v785_v58 = vsel %vm127_vm1, %v783_v60, %v784_v5  ;;  %v897_v34 = vmul.f32 %v782_v53, %v2092_v43  ;;  %v913_v8 = vmul.f32 %v565_v62, %v2094_v44 }
  0xcc   :  { %v833_v52 = vadd.f32 %v817_v11, %v801_v6  ;;  %v944_v63 = vmul.f32 %v2712_v41, %v785_v58  ;;  %v692_v39 = vmul.f32 %v2816_v37, %v2051_v19  ;;  %v975_v13 = vadd.f32 %v959_v59, %v880_v55 }
  0xcd   :  { %v771_v1 = vadd.f32 %v2729_v25, %v755_v32  ;;  %v708_v17 = vmul.f32 %v2779_v7, %v2053_v20  ;;  %v740_v33 = vmul.f32 %v2811_v27, %v2055_v21  ;;  %v928_v30 = vadd.f32 %v913_v8, %v897_v34 }
  0xce   :  { %v865_v16 = vadd.f32 %v849_v18, %v833_v52  ;;  %v778_v61 = vrot.slane %v2899_v35, 7  ;;  %v788_v14 = vsel %vm127_vm1, %v784_v5, 0.0  ;;  %992 = vst [vmem:[#allocation7 + $0xd8] sm:$0xff] %v975_v13  ;;  %v802_v37 = vmul.f32 %v2874_v12, %v2057_v22 }
  0xcf   :  { %v724_v4 = vadd.f32 %v708_v17, %v692_v39  ;;  %v818_v51 = vmul.f32 %v2837_v23, %v2083_v40  ;;  %v850_v7 = vmul.f32 %v2869_v15, %v2090_v42  ;;  %v960_v24 = vadd.f32 %v944_v63, %v928_v30  ;;  %v2956_v39 = vld [vmem:[#allocation2 + $0x100] sm:$0xff] }
  0xd0   :  { %v881_v38 = vadd.f32 %v865_v16, %v771_v1  ;;  %v779_v27 = vsel %vm79_vm0, %v777_v48, %v778_v61  ;;  %v914_v56 = vmul.f32 %v2899_v35, %v2094_v44  ;;  %v945_v26 = vmul.f32 %v2712_v41, %v788_v14 }
  0xd1   :  { %v756_v31 = vadd.f32 %v740_v33, %v724_v4  ;;  %v834_v47 = vadd.f32 %v818_v51, %v802_v37  ;;  %v898_v28 = vmul.f32 %v779_v27, %v2092_v43  ;;  %v693_v50 = vmul.f32 %v2843_v57, %v2051_v19  ;;  %v2970_v37 = vld [vmem:[#allocation2 + $0x108] sm:$0xff] }
  0xd2   :  { %v976_v46 = vadd.f32 %v960_v24, %v881_v38  ;;  %v709_v60 = vmul.f32 %v2822_v0, %v2053_v20  ;;  %v741_v45 = vmul.f32 %v2849_v49, %v2055_v21  ;;  %v803_v5 = vmul.f32 %v782_v53, %v2057_v22 }
  0xd3   :  { %v772_v48 = vadd.f32 %v2729_v25, %v756_v31  ;;  %v866_v59 = vadd.f32 %v850_v7, %v834_v47  ;;  %v929_v29 = vadd.f32 %v914_v56, %v898_v28  ;;  %v819_v11 = vmul.f32 %v565_v62, %v2083_v40  ;;  %v2981_v31 = vld [vmem:[#allocation2 + $0x118] sm:$0xff] }
  0xd4   :  { %993 = vst [vmem:[#allocation7 + $0xe0] sm:$0xff] %v976_v46  ;;  %v725_v6 = vadd.f32 %v709_v60, %v693_v50  ;;  %v851_v18 = vmul.f32 %v785_v58, %v2090_v42  ;;  %v899_v57 = vmul.f32 %v2092_v43, %v2039_v9  ;;  %v915_v32 = vmul.f32 0.0, %v2094_v44 }
  0xd5   :  { %v882_v55 = vadd.f32 %v866_v59, %v772_v48  ;;  %v961_v0 = vadd.f32 %v945_v26, %v929_v29  ;;  %v946_v49 = vmul.f32 %v2712_v41, %v2035_v3  ;;  %v835_v52 = vadd.f32 %v819_v11, %v803_v5 }
  0xd6   :  { %v757_v34 = vadd.f32 %v741_v45, %v725_v6  ;;  %v694_v53 = vmul.f32 %v2874_v12, %v2051_v19  ;;  %v710_v62 = vmul.f32 %v2837_v23, %v2053_v20  ;;  %v930_v58 = vadd.f32 %v915_v32, %v899_v57  ;;  %v2961_v12 = vld [vmem:[#allocation2 + $0x110] sm:$0xff] }
  0xd7   :  { %v977_v8 = vadd.f32 %v961_v0, %v882_v55  ;;  %v742_v9 = vmul.f32 %v2869_v15, %v2055_v21  ;;  %v804_v63 = vmul.f32 %v779_v27, %v2057_v22  ;;  %v867_v3 = vadd.f32 %v851_v18, %v835_v52 }
  0xd8   :  { %v773_v13 = vadd.f32 %v2729_v25, %v757_v34  ;;  %v726_v1 = vadd.f32 %v710_v62, %v694_v53  ;;  %v820_v17 = vmul.f32 %v2899_v35, %v2083_v40  ;;  %v2963_v23 = vadd.f32 %v946_v49, %v930_v58  ;;  %v3007_v34 = vld [vmem:[#allocation2 + $0x120] sm:$0xff] }
  0xd9   :  { %994 = vst [vmem:[#allocation7 + $0xe8] sm:$0xff] %v977_v8  ;;  %v852_v33 = vmul.f32 %v788_v14, %v2090_v42  ;;  %v900_v15 = vmul.f32 %v2092_v43, %v2033_v2  ;;  %v947_v16 = vmul.f32 %v2712_v41, %v2043_v10  ;;  %v1030_v35 = vrot.slane %v2956_v39, 7 }
  0xda   :  { %v883_v30 = vadd.f32 %v867_v3, %v773_v13  ;;  %v758_v61 = vadd.f32 %v742_v9, %v726_v1  ;;  %v836_v4 = vadd.f32 %v820_v17, %v804_v63  ;;  %v1033_v7 = vrot.slane %v2961_v12, 7 }
  0xdb   :  { %v931_v51 = vadd.f32 %v915_v32, %v900_v15  ;;  %v1072_v38 = vrot.slane %v2956_v39, 1  ;;  %v1073_v14 = vrot.slane %v2970_v37, 1  ;;  %v1065_v10 = vsel %vm79_vm0, 0.0, %v1030_v35 }
  0xdc   :  { %v978_v24 = vadd.f32 %v2963_v23, %v883_v30  ;;  %v774_v2 = vadd.f32 %v2729_v25, %v758_v61  ;;  %v868_v27 = vadd.f32 %v852_v33, %v836_v4  ;;  %v2984_v47 = vsel %vm79_vm0, 0.0, %v1033_v7  ;;  %v3026_v33 = vld [vmem:[#allocation2 + $0x128] sm:$0xff] }
  0xdd   :  { %v2979_v56 = vadd.f32 %v947_v16, %v931_v51  ;;  %v1074_v28 = vsel %vm127_vm1, %v1072_v38, %v1073_v14  ;;  %v1075_v26 = vrot.slane %v2961_v12, 1  ;;  %v1076_v50 = vrot.slane %v2981_v31, 1 }
  0xde   :  { %995 = vst [vmem:[#allocation7 + $0xf0] sm:$0xff] %v978_v24  ;;  %v884_v46 = vadd.f32 %v868_v27, %v774_v2  ;;  %v1212_v60 = vmul.f32 %v1065_v10, %v2057_v22  ;;  %v1228_v45 = vmul.f32 %v2956_v39, %v2083_v40  ;;  %v1260_v48 = vmul.f32 %v1074_v28, %v2090_v42 }
  0xdf   :  { %v1322_v59 = vmul.f32 %v2984_v47, %v2092_v43  ;;  %v1338_v29 = vmul.f32 %v2961_v12, %v2094_v44  ;;  %v1031_v5 = vrot.slane %v2970_v37, 7  ;;  %v3000_v11 = vsel %vm127_vm1, %v1075_v26, %v1076_v50 }
  0xe0   :  { %v979_v6 = vadd.f32 %v2979_v56, %v884_v46  ;;  %v1244_v18 = vadd.f32 %v1228_v45, %v1212_v60  ;;  %v1034_v57 = vrot.slane %v2981_v31, 7  ;;  %v1370_v0 = vmul.f32 %v2712_v41, %v3000_v11 }
  0xe1   :  { %v1354_v55 = vadd.f32 %v1338_v29, %v1322_v59  ;;  %v1032_v32 = vsel %vm79_vm0, %v1030_v35, %v1031_v5  ;;  %v1107_v49 = vsel %vm127_vm1, %v1073_v14, 0.0  ;;  %v3013_v62 = vsel %vm127_vm1, %v1076_v50, 0.0 }
  0xe2   :  { %996 = vst [vmem:[#allocation7 + $0xf8] sm:$0xff] %v979_v6  ;;  %v1276_v52 = vadd.f32 %v1260_v48, %v1244_v18  ;;  %v3010_v53 = vsel %vm79_vm0, %v1033_v7, %v1034_v57  ;;  %v1213_v8 = vmul.f32 %v1032_v32, %v2057_v22  ;;  %v1229_v9 = vmul.f32 %v2970_v37, %v2083_v40 }
  0xe3   :  { %v1386_v58 = vadd.f32 %v1370_v0, %v1354_v55  ;;  %v1261_v63 = vmul.f32 %v1107_v49, %v2090_v42  ;;  %v1323_v13 = vmul.f32 %v3010_v53, %v2092_v43  ;;  %v1339_v1 = vmul.f32 %v2981_v31, %v2094_v44 }
  0xe4   :  { %v1292_v3 = vadd.f32 %v1276_v52, %v2109_v54  ;;  %v1371_v17 = vmul.f32 %v2712_v41, %v3013_v62  ;;  %v1036_v15 = vrot.slane %v3007_v34, 7  ;;  %v1245_v16 = vadd.f32 %v1229_v9, %v1213_v8  ;;  %v3066_v8 = vld [vmem:[#allocation2 + $0x130] sm:$0xff] }
  0xe5   :  { %v1078_v30 = vrot.slane %v3007_v34, 1  ;;  %v1079_v61 = vrot.slane %v3026_v33, 1  ;;  %v1114_v4 = vmul.f32 %v1065_v10, %v2051_v19  ;;  %v1355_v51 = vadd.f32 %v1339_v1, %v1323_v13 }
  0xe6   :  { %v1402_v35 = vadd.f32 %v1386_v58, %v1292_v3  ;;  %v3033_v54 = vsel %vm79_vm0, 0.0, %v1036_v15  ;;  %v1128_v7 = vmul.f32 %v2956_v39, %v2053_v20  ;;  %v1277_v38 = vadd.f32 %v1261_v63, %v1245_v16  ;;  %v3080_v16 = vld [vmem:[#allocation2 + $0x138] sm:$0xff] }
  0xe7   :  { %v3038_v14 = vsel %vm127_vm1, %v1078_v30, %v1079_v61  ;;  %v1156_v24 = vmul.f32 %v1074_v28, %v2055_v21  ;;  %v1214_v2 = vmul.f32 %v2984_v47, %v2057_v22  ;;  %v1387_v27 = vadd.f32 %v1371_v17, %v1355_v51 }
  0xe8   :  { %1419 = vst [vmem:[#allocation7 + $0x100] sm:$0xff] %v1402_v35  ;;  %v1142_v10 = vadd.f32 %v1128_v7, %v1114_v4  ;;  %v1230_v26 = vmul.f32 %v2961_v12, %v2083_v40  ;;  %v1262_v46 = vmul.f32 %v3000_v11, %v2090_v42  ;;  %v1293_v39 = vadd.f32 %v1277_v38, %v2145_v36 }
  0xe9   :  { %v1324_v50 = vmul.f32 %v3033_v54, %v2092_v43  ;;  %v1340_v28 = vmul.f32 %v3007_v34, %v2094_v44  ;;  %v1372_v60 = vmul.f32 %v2712_v41, %v3038_v14  ;;  %v1037_v59 = vrot.slane %v3026_v33, 7 }
  0xea   :  { %v1170_v45 = vadd.f32 %v1156_v24, %v1142_v10  ;;  %v1246_v48 = vadd.f32 %v1230_v26, %v1214_v2  ;;  %v3056_v29 = vsel %vm127_vm1, %v1079_v61, 0.0  ;;  %v1403_v5 = vadd.f32 %v1387_v27, %v1293_v39 }
  0xeb   :  { %v1356_v6 = vadd.f32 %v1340_v28, %v1324_v50  ;;  %v1115_v36 = vmul.f32 %v1032_v32, %v2051_v19  ;;  %v1129_v18 = vmul.f32 %v2970_v37, %v2053_v20  ;;  %v3063_v0 = vsel %vm79_vm0, %v1036_v15, %v1037_v59 }
  0xec   :  { %v1184_v57 = vadd.f32 %v2729_v25, %v1170_v45  ;;  %v1278_v55 = vadd.f32 %v1262_v46, %v1246_v48  ;;  %v1157_v52 = vmul.f32 %v1107_v49, %v2055_v21  ;;  %1420 = vst [vmem:[#allocation7 + $0x108] sm:$0xff] %v1403_v5  ;;  %v1215_v63 = vmul.f32 %v3010_v53, %v2057_v22 }
  0xed   :  { %v1388_v58 = vadd.f32 %v1372_v60, %v1356_v6  ;;  %v1143_v9 = vadd.f32 %v1129_v18, %v1115_v36  ;;  %v1231_v32 = vmul.f32 %v2981_v31, %v2083_v40  ;;  %v1263_v13 = vmul.f32 %v3013_v62, %v2090_v42 }
  0xee   :  { %v1294_v37 = vadd.f32 %v1278_v55, %v1184_v57  ;;  %v1325_v3 = vmul.f32 %v3063_v0, %v2092_v43  ;;  %v1341_v49 = vmul.f32 %v3026_v33, %v2094_v44  ;;  %v1373_v15 = vmul.f32 %v2712_v41, %v3056_v29 }
  0xef   :  { %v1171_v1 = vadd.f32 %v1157_v52, %v1143_v9  ;;  %v1247_v17 = vadd.f32 %v1231_v32, %v1215_v63  ;;  %v1039_v30 = vrot.slane %v3066_v8, 7  ;;  %v1081_v35 = vrot.slane %v3066_v8, 1  ;;  %v3125_v32 = vld [vmem:[#allocation2 + $0x140] sm:$0xff] }
  0xf0   :  { %v1404_v61 = vadd.f32 %v1388_v58, %v1294_v37  ;;  %v1357_v4 = vadd.f32 %v1341_v49, %v1325_v3  ;;  %v1082_v51 = vrot.slane %v3080_v16, 1  ;;  %v1116_v2 = vmul.f32 %v2984_v47, %v2051_v19 }
  0xf1   :  { %v1185_v7 = vadd.f32 %v2729_v25, %v1171_v1  ;;  %v1279_v38 = vadd.f32 %v1263_v13, %v1247_v17  ;;  %v3087_v24 = vsel %vm79_vm0, 0.0, %v1039_v30  ;;  %v1130_v26 = vmul.f32 %v2961_v12, %v2053_v20 }
  0xf2   :  { %1421 = vst [vmem:[#allocation7 + $0x110] sm:$0xff] %v1404_v61  ;;  %v1389_v27 = vadd.f32 %v1373_v15, %v1357_v4  ;;  %v3092_v10 = vsel %vm127_vm1, %v1081_v35, %v1082_v51  ;;  %v1158_v46 = vmul.f32 %v3000_v11, %v2055_v21  ;;  %v1216_v50 = vmul.f32 %v3033_v54, %v2057_v22  ;;  %v3138_v61 = vld [vmem:[#allocation2 + $0x148] sm:$0xff] }
  0xf3   :  { %v1295_v39 = vadd.f32 %v1279_v38, %v1185_v7  ;;  %v1232_v28 = vmul.f32 %v3007_v34, %v2083_v40  ;;  %v1264_v47 = vmul.f32 %v3038_v14, %v2090_v42  ;;  %v1144_v60 = vadd.f32 %v1130_v26, %v1116_v2 }
  0xf4   :  { %v1326_v45 = vmul.f32 %v3087_v24, %v2092_v43  ;;  %v1342_v12 = vmul.f32 %v3066_v8, %v2094_v44  ;;  %v1374_v11 = vmul.f32 %v2712_v41, %v3092_v10  ;;  %v1040_v5 = vrot.slane %v3080_v16, 7 }
  0xf5   :  { %v1405_v48 = vadd.f32 %v1389_v27, %v1295_v39  ;;  %v1248_v59 = vadd.f32 %v1232_v28, %v1216_v50  ;;  %v3112_v6 = vsel %vm127_vm1, %v1082_v51, 0.0  ;;  %v1172_v36 = vadd.f32 %v1158_v46, %v1144_v60 }
  0xf6   :  { %v1358_v18 = vadd.f32 %v1342_v12, %v1326_v45  ;;  %v1117_v57 = vmul.f32 %v3010_v53, %v2051_v19  ;;  %v1131_v55 = vmul.f32 %v2981_v31, %v2053_v20  ;;  %v3119_v58 = vsel %vm79_vm0, %v1039_v30, %v1040_v5 }
  0xf7   :  { %1422 = vst [vmem:[#allocation7 + $0x118] sm:$0xff] %v1405_v48  ;;  %v1280_v52 = vadd.f32 %v1264_v47, %v1248_v59  ;;  %v1159_v9 = vmul.f32 %v3013_v62, %v2055_v21  ;;  %v1217_v63 = vmul.f32 %v3063_v0, %v2057_v22  ;;  %v1186_v37 = vadd.f32 %v2729_v25, %v1172_v36 }
  0xf8   :  { %v1390_v13 = vadd.f32 %v1374_v11, %v1358_v18  ;;  %v1145_v53 = vadd.f32 %v1131_v55, %v1117_v57  ;;  %v1233_v31 = vmul.f32 %v3026_v33, %v2083_v40  ;;  %v1265_v3 = vmul.f32 %v3056_v29, %v2090_v42 }
  0xf9   :  { %v1327_v49 = vmul.f32 %v3119_v58, %v2092_v43  ;;  %v1343_v62 = vmul.f32 %v3080_v16, %v2094_v44  ;;  %v1375_v1 = vmul.f32 %v2712_v41, %v3112_v6  ;;  %v1296_v17 = vadd.f32 %v1280_v52, %v1186_v37 }
  0xfa   :  { %v1173_v15 = vadd.f32 %v1159_v9, %v1145_v53  ;;  %v1249_v30 = vadd.f32 %v1233_v31, %v1217_v63  ;;  %v1042_v4 = vrot.slane %v3125_v32, 7  ;;  %v1084_v51 = vrot.slane %v3125_v32, 1  ;;  %v3183_v31 = vld [vmem:[#allocation2 + $0x150] sm:$0xff] }
  0xfb   :  { %v1359_v35 = vadd.f32 %v1343_v62, %v1327_v49  ;;  %v1085_v7 = vrot.slane %v3138_v61, 1  ;;  %v1118_v38 = vmul.f32 %v3033_v54, %v2051_v19  ;;  %v1406_v2 = vadd.f32 %v1390_v13, %v1296_v17 }
  0xfc   :  { %v1187_v27 = vadd.f32 %v2729_v25, %v1173_v15  ;;  %v1281_v26 = vadd.f32 %v1265_v3, %v1249_v30  ;;  %v3147_v46 = vsel %vm79_vm0, 0.0, %v1042_v4  ;;  %v1132_v28 = vmul.f32 %v3007_v34, %v2053_v20 }
  0xfd   :  { %v1391_v39 = vadd.f32 %v1375_v1, %v1359_v35  ;;  %v3150_v50 = vsel %vm127_vm1, %v1084_v51, %v1085_v7  ;;  %v1160_v47 = vmul.f32 %v3038_v14, %v2055_v21  ;;  %1423 = vst [vmem:[#allocation7 + $0x120] sm:$0xff] %v1406_v2  ;;  %v1218_v54 = vmul.f32 %v3087_v24, %v2057_v22  ;;  %v3196_v35 = vld [vmem:[#allocation2 + $0x158] sm:$0xff] }
  0xfe   :  { %v1297_v60 = vadd.f32 %v1281_v26, %v1187_v27  ;;  %v1234_v45 = vmul.f32 %v3066_v8, %v2083_v40  ;;  %v1266_v12 = vmul.f32 %v3092_v10, %v2090_v42  ;;  %v1146_v11 = vadd.f32 %v1132_v28, %v1118_v38 }
  0xff   :  { %v1328_v48 = vmul.f32 %v3147_v46, %v2092_v43  ;;  %v1344_v34 = vmul.f32 %v3125_v32, %v2094_v44  ;;  %v1376_v14 = vmul.f32 %v2712_v41, %v3150_v50  ;;  %v1043_v36 = vrot.slane %v3138_v61, 7 }
 0x100   :  { %v1407_v59 = vadd.f32 %v1391_v39, %v1297_v60  ;;  %v1250_v5 = vadd.f32 %v1234_v45, %v1218_v54  ;;  %v3170_v18 = vsel %vm127_vm1, %v1085_v7, 0.0  ;;  %v1174_v57 = vadd.f32 %v1160_v47, %v1146_v11 }
 0x101   :  { %v1360_v55 = vadd.f32 %v1344_v34, %v1328_v48  ;;  %v1119_v52 = vmul.f32 %v3063_v0, %v2051_v19  ;;  %v1133_v9 = vmul.f32 %v3026_v33, %v2053_v20  ;;  %v3177_v37 = vsel %vm79_vm0, %v1042_v4, %v1043_v36 }
 0x102   :  { %1424 = vst [vmem:[#allocation7 + $0x128] sm:$0xff] %v1407_v59  ;;  %v1282_v63 = vadd.f32 %v1266_v12, %v1250_v5  ;;  %v1161_v13 = vmul.f32 %v3056_v29, %v2055_v21  ;;  %v1219_v53 = vmul.f32 %v3119_v58, %v2057_v22  ;;  %v1188_v3 = vadd.f32 %v2729_v25, %v1174_v57 }
 0x103   :  { %v1392_v49 = vadd.f32 %v1376_v14, %v1360_v55  ;;  %v1147_v0 = vadd.f32 %v1133_v9, %v1119_v52  ;;  %v1235_v33 = vmul.f32 %v3080_v16, %v2083_v40  ;;  %v1267_v62 = vmul.f32 %v3112_v6, %v2090_v42 }
 0x104   :  { %v1329_v1 = vmul.f32 %v3177_v37, %v2092_v43  ;;  %v1345_v29 = vmul.f32 %v3138_v61, %v2094_v44  ;;  %v1377_v17 = vmul.f32 %v2712_v41, %v3170_v18  ;;  %v1298_v15 = vadd.f32 %v1282_v63, %v1188_v3 }
 0x105   :  { %v1175_v30 = vadd.f32 %v1161_v13, %v1147_v0  ;;  %v1251_v4 = vadd.f32 %v1235_v33, %v1219_v53  ;;  %v1045_v51 = vrot.slane %v3183_v31, 7  ;;  %v1087_v38 = vrot.slane %v3183_v31, 1  ;;  %v3241_v33 = vld [vmem:[#allocation2 + $0x160] sm:$0xff] }
 0x106   :  { %v1361_v7 = vadd.f32 %v1345_v29, %v1329_v1  ;;  %v1088_v2 = vrot.slane %v3196_v35, 1  ;;  %v1120_v27 = vmul.f32 %v3087_v24, %v2051_v19  ;;  %v1408_v26 = vadd.f32 %v1392_v49, %v1298_v15 }
 0x107   :  { %v1189_v39 = vadd.f32 %v2729_v25, %v1175_v30  ;;  %v1283_v28 = vadd.f32 %v1267_v62, %v1251_v4  ;;  %v3205_v47 = vsel %vm79_vm0, 0.0, %v1045_v51  ;;  %v1134_v45 = vmul.f32 %v3066_v8, %v2053_v20 }
 0x108   :  { %v1393_v60 = vadd.f32 %v1377_v17, %v1361_v7  ;;  %v3208_v54 = vsel %vm127_vm1, %v1087_v38, %v1088_v2  ;;  %v1162_v12 = vmul.f32 %v3092_v10, %v2055_v21  ;;  %1425 = vst [vmem:[#allocation7 + $0x130] sm:$0xff] %v1408_v26  ;;  %v1220_v24 = vmul.f32 %v3147_v46, %v2057_v22  ;;  %v3254_v7 = vld [vmem:[#allocation2 + $0x168] sm:$0xff] }
 0x109   :  { %v1299_v11 = vadd.f32 %v1283_v28, %v1189_v39  ;;  %v1236_v48 = vmul.f32 %v3125_v32, %v2083_v40  ;;  %v1268_v34 = vmul.f32 %v3150_v50, %v2090_v42  ;;  %v1148_v14 = vadd.f32 %v1134_v45, %v1120_v27 }
 0x10a   :  { %v1330_v59 = vmul.f32 %v3205_v47, %v2092_v43  ;;  %v1346_v8 = vmul.f32 %v3183_v31, %v2094_v44  ;;  %v1378_v10 = vmul.f32 %v2712_v41, %v3208_v54  ;;  %v1046_v57 = vrot.slane %v3196_v35, 7 }
 0x10b   :  { %v1409_v5 = vadd.f32 %v1393_v60, %v1299_v11  ;;  %v1252_v36 = vadd.f32 %v1236_v48, %v1220_v24  ;;  %v3228_v55 = vsel %vm127_vm1, %v1088_v2, 0.0  ;;  %v1176_v52 = vadd.f32 %v1162_v12, %v1148_v14 }
 0x10c   :  { %v1362_v9 = vadd.f32 %v1346_v8, %v1330_v59  ;;  %v1121_v63 = vmul.f32 %v3119_v58, %v2051_v19  ;;  %v1135_v13 = vmul.f32 %v3080_v16, %v2053_v20  ;;  %v3235_v3 = vsel %vm79_vm0, %v1045_v51, %v1046_v57 }
 0x10d   :  { %1426 = vst [vmem:[#allocation7 + $0x138] sm:$0xff] %v1409_v5  ;;  %v1284_v53 = vadd.f32 %v1268_v34, %v1252_v36  ;;  %v1163_v49 = vmul.f32 %v3112_v6, %v2055_v21  ;;  %v1221_v0 = vmul.f32 %v3177_v37, %v2057_v22  ;;  %v1190_v62 = vadd.f32 %v2729_v25, %v1176_v52 }
 0x10e   :  { %v1394_v1 = vadd.f32 %v1378_v10, %v1362_v9  ;;  %v1149_v58 = vadd.f32 %v1135_v13, %v1121_v63  ;;  %v1237_v16 = vmul.f32 %v3138_v61, %v2083_v40  ;;  %v1269_v29 = vmul.f32 %v3170_v18, %v2090_v42 }
 0x10f   :  { %v1331_v17 = vmul.f32 %v3235_v3, %v2092_v43  ;;  %v1347_v6 = vmul.f32 %v3196_v35, %v2094_v44  ;;  %v1379_v15 = vmul.f32 %v2712_v41, %v3228_v55  ;;  %v1300_v30 = vadd.f32 %v1284_v53, %v1190_v62 }
 0x110   :  { %v1177_v4 = vadd.f32 %v1163_v49, %v1149_v58  ;;  %v1253_v51 = vadd.f32 %v1237_v16, %v1221_v0  ;;  %v1048_v38 = vrot.slane %v3241_v33, 7  ;;  %v1090_v27 = vrot.slane %v3241_v33, 1 }
 0x111   :  { %v1363_v2 = vadd.f32 %v1347_v6, %v1331_v17  ;;  %v1091_v26 = vrot.slane %v3254_v7, 1  ;;  %v1122_v39 = vmul.f32 %v3147_v46, %v2051_v19  ;;  %v1410_v28 = vadd.f32 %v1394_v1, %v1300_v30  ;;  %v3302_v17 = vld [vmem:[#allocation2 + $0x170] sm:$0xff] }
 0x112   :  { %v1191_v60 = vadd.f32 %v2729_v25, %v1177_v4  ;;  %v1285_v45 = vadd.f32 %v1269_v29, %v1253_v51  ;;  %v3263_v12 = vsel %vm79_vm0, 0.0, %v1048_v38  ;;  %v1136_v48 = vmul.f32 %v3125_v32, %v2053_v20 }
 0x113   :  { %v1395_v11 = vadd.f32 %v1379_v15, %v1363_v2  ;;  %v3266_v24 = vsel %vm127_vm1, %v1090_v27, %v1091_v26  ;;  %v1164_v34 = vmul.f32 %v3150_v50, %v2055_v21  ;;  %1427 = vst [vmem:[#allocation7 + $0x140] sm:$0xff] %v1410_v28  ;;  %v1222_v46 = vmul.f32 %v3205_v47, %v2057_v22  ;;  %v3310_v15 = vld [vmem:[#allocation5 + $0x8] ss:$0 sm:$0xff] }
 0x114   :  { %v1301_v14 = vadd.f32 %v1285_v45, %v1191_v60  ;;  %v1238_v59 = vmul.f32 %v3183_v31, %v2083_v40  ;;  %v1270_v8 = vmul.f32 %v3208_v54, %v2090_v42  ;;  %v1150_v10 = vadd.f32 %v1136_v48, %v1122_v39  ;;  %v3324_v60 = vld [vmem:[%s3863_s2] ss:$0 sm:$0xff]  ;;  %v3327_v48 = vld [vmem:[#allocation2 + $0x178] sm:$0xff]  ;;  %s1982_s2 = smov [#allocation7]  }
 0x115   :  { %v1332_v5 = vmul.f32 %v3263_v12, %v2092_v43  ;;  %v1348_v32 = vmul.f32 %v3241_v33, %v2094_v44  ;;  %v1380_v50 = vmul.f32 %v2712_v41, %v3266_v24  ;;  %v1049_v52 = vrot.slane %v3254_v7, 7  ;;  %s1880_s15 = sshll.u32 %s1982_s2, 4  ;;  %s1881_s15 = int_to_ptr.vmem [resolvable:$true] %s1880_s15 }
 0x116   :  { %v1411_v36 = vadd.f32 %v1395_v11, %v1301_v14  ;;  %v1254_v57 = vadd.f32 %v1238_v59, %v1222_v46  ;;  %v3286_v9 = vsel %vm127_vm1, %v1091_v26, 0.0  ;;  %v1178_v63 = vadd.f32 %v1164_v34, %v1150_v10  ;;  %s1949_s16 = scalar_lea.vmem %s1881_s15, 8192  ;;  %p1954_p3 = scmp.lt.s32.totalorder %s1881_s15, %s1881_s15 }
 0x117   :  { %v1364_v13 = vadd.f32 %v1348_v32, %v1332_v5  ;;  %v1123_v53 = vmul.f32 %v3177_v37, %v2051_v19  ;;  %v1137_v49 = vmul.f32 %v3138_v61, %v2053_v20  ;;  %v3293_v62 = vsel %vm79_vm0, %v1048_v38, %v1049_v52  ;;  %p1950_p2 = scmp.ne.s32.totalorder %s1881_s15, %s1949_s16  ;;  %p1955_p4 = scmp.lt.s32.totalorder %s1949_s16, %s1949_s16 }
 0x118   :  { %1428 = vst [vmem:[#allocation7 + $0x148] sm:$0xff] %v1411_v36  ;;  %v1286_v0 = vadd.f32 %v1270_v8, %v1254_v57  ;;  %v1165_v41 = vmul.f32 %v3170_v18, %v2055_v21  ;;  %v1223_v1 = vmul.f32 %v3235_v3, %v2057_v22  ;;  %v1192_v58 = vadd.f32 %v2729_v25, %v1178_v63 }
 0x119   :  { %v1396_v16 = vadd.f32 %v1380_v50, %v1364_v13  ;;  %v1151_v29 = vadd.f32 %v1137_v49, %v1123_v53  ;;  %v1239_v37 = vmul.f32 %v3196_v35, %v2083_v40  ;;  %v1271_v61 = vmul.f32 %v3228_v55, %v2090_v42  ;;  %p1956_p5 = por %p1955_p4, %p1954_p3 }
 0x11a   :  { %v1333_v6 = vmul.f32 %v3293_v62, %v2092_v43  ;;  %v1349_v18 = vmul.f32 %v3254_v7, %v2094_v44  ;;  %v1381_v25 = vmul.f32 %v3310_v15, %v3286_v9  ;;  %v1302_v30 = vadd.f32 %v1286_v0, %v1192_v58 }
 0x11b   :  { %v1179_v4 = vadd.f32 %v1165_v41, %v1151_v29  ;;  %v1255_v51 = vadd.f32 %v1239_v37, %v1223_v1  ;;  %v1124_v38 = vmul.f32 %v3205_v47, %v2051_v19  ;;  %v1138_v27 = vmul.f32 %v3183_v31, %v2053_v20  ;;  %p1957_p6 = pnand %p1956_p5, %p1950_p2 }
 0x11c   :  { %v1365_v2 = vadd.f32 %v1349_v18, %v1333_v6  ;;  %v1166_v26 = vmul.f32 %v3208_v54, %v2055_v21  ;;  %v1200_v39 = vrot.slane %v3302_v17, 7  ;;  %v1412_v28 = vadd.f32 %v1396_v16, %v1302_v30 }
 0x11d   :  { %v1193_v45 = vadd.f32 %v3324_v60, %v1179_v4  ;;  %v1287_v11 = vadd.f32 %v1271_v61, %v1255_v51  ;;  %v1206_v47 = vrot.slane %v3302_v17, 1  ;;  %v1152_v31 = vadd.f32 %v1138_v27, %v1124_v38  ;;  %v3375_v38 = vld [vmem:[#allocation2 + $0x180] sm:$0xff] }
 0x11e   :  { %v1397_v34 = vadd.f32 %v1381_v25, %v1365_v2  ;;  %v3331_v14 = vsel %vm79_vm0, 0.0, %v1200_v39  ;;  %v1207_v54 = vrot.slane %v3327_v48, 1  ;;  %1429 = vst [vmem:[#allocation7 + $0x150] sm:$0xff] %v1412_v28  ;;  %v1224_v59 = vmul.f32 %v3263_v12, %v2057_v22 }
 0x11f   :  { %v1303_v46 = vadd.f32 %v1287_v11, %v1193_v45  ;;  %v1240_v8 = vmul.f32 %v3241_v33, %v2083_v40  ;;  %v1272_v10 = vmul.f32 %v3266_v24, %v2090_v42  ;;  %v1180_v5 = vadd.f32 %v1166_v26, %v1152_v31  ;;  %v3388_v31 = vld [vmem:[#allocation2 + $0x188] sm:$0xff] }
 0x120   :  { %v3341_v32 = vsel %vm127_vm1, %v1206_v47, %v1207_v54  ;;  %v1334_v50 = vmul.f32 %v3331_v14, %v2092_v43  ;;  %v1350_v36 = vmul.f32 %v3302_v17, %v2094_v44  ;;  %v1125_v13 = vmul.f32 %v3235_v3, %v2051_v19 }
 0x121   :  { %v1413_v57 = vadd.f32 %v1397_v34, %v1303_v46  ;;  %v1256_v52 = vadd.f32 %v1240_v8, %v1224_v59  ;;  %v1382_v63 = vmul.f32 %v3310_v15, %v3341_v32  ;;  %v1194_v53 = vadd.f32 %v3324_v60, %v1180_v5 }
 0x122   :  { %v1366_v49 = vadd.f32 %v1350_v36, %v1334_v50  ;;  %v1139_v0 = vmul.f32 %v3196_v35, %v2053_v20  ;;  %v1167_v41 = vmul.f32 %v3228_v55, %v2055_v21  ;;  %v1201_v58 = vrot.slane %v3327_v48, 7 }
 0x123   :  { %1430 = vst [vmem:[#allocation7 + $0x158] sm:$0xff] %v1413_v57  ;;  %v1288_v1 = vadd.f32 %v1272_v10, %v1256_v52  ;;  %v3358_v16 = vsel %vm127_vm1, %v1207_v54, 0.0  ;;  %v1225_v29 = vmul.f32 %v3293_v62, %v2057_v22  ;;  %v1241_v61 = vmul.f32 %v3254_v7, %v2083_v40 }
 0x124   :  { %v1398_v3 = vadd.f32 %v1382_v63, %v1366_v49  ;;  %v1153_v37 = vadd.f32 %v1139_v0, %v1125_v13  ;;  %v1273_v35 = vmul.f32 %v3286_v9, %v2090_v42  ;;  %v3367_v55 = vsel %vm79_vm0, %v1200_v39, %v1201_v58 }
 0x125   :  { %v1304_v6 = vadd.f32 %v1288_v1, %v1194_v53  ;;  %v1351_v18 = vmul.f32 %v3327_v48, %v2094_v44  ;;  %v1383_v25 = vmul.f32 %v3310_v15, %v3358_v16  ;;  %v1257_v4 = vadd.f32 %v1241_v61, %v1225_v29 }
 0x126   :  { %v1181_v30 = vadd.f32 %v1167_v41, %v1153_v37  ;;  %v1335_v51 = vmul.f32 %v3367_v55, %v2092_v43  ;;  %v1126_v2 = vmul.f32 %v3263_v12, %v2051_v19  ;;  %v1140_v26 = vmul.f32 %v3241_v33, %v2053_v20  ;;  %v3420_v37 = vld [vmem:[#allocation2 + $0x190] sm:$0xff] }
 0x127   :  { %v1414_v27 = vadd.f32 %v1398_v3, %v1304_v6  ;;  %v1168_v39 = vmul.f32 %v3266_v24, %v2055_v21  ;;  %v1226_v28 = vmul.f32 %v3331_v14, %v2057_v22  ;;  %v1289_v11 = vadd.f32 %v1273_v35, %v1257_v4 }
 0x128   :  { %v1195_v45 = vadd.f32 %v3324_v60, %v1181_v30  ;;  %v1367_v47 = vadd.f32 %v1351_v18, %v1335_v51  ;;  %v1242_v34 = vmul.f32 %v3302_v17, %v2083_v40  ;;  %v1154_v12 = vadd.f32 %v1140_v26, %v1126_v2  ;;  %v3433_v2 = vld [vmem:[#allocation2 + $0x198] sm:$0xff] }
 0x129   :  { %1431 = vst [vmem:[#allocation7 + $0x160] sm:$0xff] %v1414_v27  ;;  %v1274_v33 = vmul.f32 %v3341_v32, %v2090_v42  ;;  %v1310_v54 = vrot.slane %v3375_v38, 7  ;;  %v1316_v24 = vrot.slane %v3375_v38, 1  ;;  %v1317_v10 = vrot.slane %v3388_v31, 1 }
 0x12a   :  { %v1305_v46 = vadd.f32 %v1289_v11, %v1195_v45  ;;  %v1399_v59 = vadd.f32 %v1383_v25, %v1367_v47  ;;  %v1258_v8 = vadd.f32 %v1242_v34, %v1226_v28  ;;  %v1182_v5 = vadd.f32 %v1168_v39, %v1154_v12 }
 0x12b   :  { %v3396_v50 = vsel %vm79_vm0, 0.0, %v1310_v54  ;;  %v1352_v36 = vmul.f32 %v3375_v38, %v2094_v44  ;;  %v1127_v57 = vmul.f32 %v3293_v62, %v2051_v19  ;;  %v3403_v13 = vsel %vm127_vm1, %v1316_v24, %v1317_v10 }
 0x12c   :  { %v1415_v52 = vadd.f32 %v1399_v59, %v1305_v46  ;;  %v1290_v63 = vadd.f32 %v1274_v33, %v1258_v8  ;;  %v1336_v53 = vmul.f32 %v3396_v50, %v2092_v43  ;;  %v1196_v49 = vadd.f32 %v3324_v60, %v1182_v5 }
 0x12d   :  { %v1384_v0 = vmul.f32 %v3310_v15, %v3403_v13  ;;  %v1141_v41 = vmul.f32 %v3254_v7, %v2053_v20  ;;  %v1169_v1 = vmul.f32 %v3286_v9, %v2055_v21  ;;  %v1227_v58 = vmul.f32 %v3367_v55, %v2057_v22 }
 0x12e   :  { %1432 = vst [vmem:[#allocation7 + $0x168] sm:$0xff] %v1415_v52  ;;  %v1368_v62 = vadd.f32 %v1352_v36, %v1336_v53  ;;  %v1243_v29 = vmul.f32 %v3327_v48, %v2083_v40  ;;  %v1275_v3 = vmul.f32 %v3358_v16, %v2090_v42  ;;  %v1306_v61 = vadd.f32 %v1290_v63, %v1196_v49 }
 0x12f   :  { %v1155_v35 = vadd.f32 %v1141_v41, %v1127_v57  ;;  %v1311_v7 = vrot.slane %v3388_v31, 7  ;;  %v3424_v6 = vsel %vm127_vm1, %v1317_v10, 0.0  ;;  %v1353_v25 = vmul.f32 %v3388_v31, %v2094_v44 }
 0x130   :  { %v1400_v9 = vadd.f32 %v1384_v0, %v1368_v62  ;;  %v1259_v18 = vadd.f32 %v1243_v29, %v1227_v58  ;;  %v1385_v30 = vmul.f32 %v3310_v15, %v3424_v6  ;;  %v1476_v27 = vrot.slane %v3420_v37, 7 }
 0x131   :  { %v1183_v4 = vadd.f32 %v1169_v1, %v1155_v35  ;;  %v3431_v51 = vsel %vm79_vm0, %v1310_v54, %v1311_v7  ;;  %v1524_v26 = vrot.slane %v3420_v37, 1  ;;  %v1525_v11 = vrot.slane %v3433_v2, 1  ;;  %v3479_v35 = vld [vmem:[#allocation2 + $0x1a0] sm:$0xff] }
 0x132   :  { %v1416_v39 = vadd.f32 %v1400_v9, %v1306_v61  ;;  %v1291_v28 = vadd.f32 %v1275_v3, %v1259_v18  ;;  %v1337_v45 = vmul.f32 %v3431_v51, %v2092_v43  ;;  %v3442_v34 = vsel %vm79_vm0, 0.0, %v1476_v27 }
 0x133   :  { %v1197_v47 = vadd.f32 %v3324_v60, %v1183_v4  ;;  %v1566_v12 = vmul.f32 %v3331_v14, %v2051_v19  ;;  %v1582_v33 = vmul.f32 %v3302_v17, %v2053_v20  ;;  %v3449_v24 = vsel %vm127_vm1, %v1524_v26, %v1525_v11 }
 0x134   :  { %1433 = vst [vmem:[#allocation7 + $0x170] sm:$0xff] %v1416_v39  ;;  %v1369_v54 = vadd.f32 %v1353_v25, %v1337_v45  ;;  %v1614_v46 = vmul.f32 %v3341_v32, %v2055_v21  ;;  %v1676_v59 = vmul.f32 %v3396_v50, %v2057_v22  ;;  %v1692_v5 = vmul.f32 %v3375_v38, %v2083_v40  ;;  %v3493_v39 = vld [vmem:[#allocation2 + $0x1a8] sm:$0xff] }
 0x135   :  { %v1307_v8 = vadd.f32 %v1291_v28, %v1197_v47  ;;  %v1598_v10 = vadd.f32 %v1582_v33, %v1566_v12  ;;  %v1724_v14 = vmul.f32 %v3403_v13, %v2090_v42  ;;  %v1772_v36 = vmul.f32 %v3442_v34, %v2092_v43 }
 0x136   :  { %v1401_v17 = vadd.f32 %v1385_v30, %v1369_v54  ;;  %v1786_v57 = vmul.f32 %v3420_v37, %v2094_v44  ;;  %v1814_v32 = vmul.f32 %v3310_v15, %v3449_v24  ;;  %v1708_v63 = vadd.f32 %v1692_v5, %v1676_v59 }
 0x137   :  { %v1630_v52 = vadd.f32 %v1614_v46, %v1598_v10  ;;  %v1477_v53 = vrot.slane %v3433_v2, 7  ;;  %v3467_v49 = vsel %vm127_vm1, %v1525_v11, 0.0  ;;  %v1567_v1 = vmul.f32 %v3367_v55, %v2051_v19 }
 0x138   :  { %v1417_v0 = vadd.f32 %v1401_v17, %v1307_v8  ;;  %v1800_v41 = vadd.f32 %v1786_v57, %v1772_v36  ;;  %v1583_v62 = vmul.f32 %v3327_v48, %v2053_v20  ;;  %v1740_v29 = vadd.f32 %v1724_v14, %v1708_v63 }
 0x139   :  { %v1646_v58 = vadd.f32 %v3324_v60, %v1630_v52  ;;  %v3475_v3 = vsel %vm79_vm0, %v1476_v27, %v1477_v53  ;;  %v1615_v61 = vmul.f32 %v3358_v16, %v2055_v21  ;;  %v1677_v55 = vmul.f32 %v3431_v51, %v2057_v22 }
 0x13a   :  { %1434 = vst [vmem:[#allocation7 + $0x178] sm:$0xff] %v1417_v0  ;;  %v1828_v7 = vadd.f32 %v1814_v32, %v1800_v41  ;;  %v1599_v9 = vadd.f32 %v1583_v62, %v1567_v1  ;;  %v1693_v48 = vmul.f32 %v3388_v31, %v2083_v40  ;;  %v1725_v25 = vmul.f32 %v3424_v6, %v2090_v42 }
 0x13b   :  { %v1756_v18 = vadd.f32 %v1740_v29, %v1646_v58  ;;  %v1773_v30 = vmul.f32 %v3475_v3, %v2092_v43  ;;  %v1787_v16 = vmul.f32 %v3433_v2, %v2094_v44  ;;  %v1815_v26 = vmul.f32 %v3310_v15, %v3467_v49 }
 0x13c   :  { %v1631_v4 = vadd.f32 %v1615_v61, %v1599_v9  ;;  %v1709_v27 = vadd.f32 %v1693_v48, %v1677_v55  ;;  %v1479_v28 = vrot.slane %v3479_v35, 7  ;;  %v1527_v47 = vrot.slane %v3479_v35, 1  ;;  %v3538_v48 = vld [vmem:[#allocation2 + $0x1b0] sm:$0xff] }
 0x13d   :  { %v1842_v45 = vadd.f32 %v1828_v7, %v1756_v18  ;;  %v1801_v11 = vadd.f32 %v1787_v16, %v1773_v30  ;;  %v1528_v12 = vrot.slane %v3493_v39, 1  ;;  %v1568_v59 = vmul.f32 %v3396_v50, %v2051_v19 }
 0x13e   :  { %v1647_v33 = vadd.f32 %v3324_v60, %v1631_v4  ;;  %v1741_v54 = vadd.f32 %v1725_v25, %v1709_v27  ;;  %v3500_v46 = vsel %vm79_vm0, 0.0, %v1479_v28  ;;  %v1584_v5 = vmul.f32 %v3375_v38, %v2053_v20 }
 0x13f   :  { %1859 = vst [vmem:[#allocation7 + $0x180] sm:$0xff] %v1842_v45  ;;  %v1829_v8 = vadd.f32 %v1815_v26, %v1801_v11  ;;  %v3505_v10 = vsel %vm127_vm1, %v1527_v47, %v1528_v12  ;;  %v1616_v14 = vmul.f32 %v3403_v13, %v2055_v21  ;;  %v1678_v36 = vmul.f32 %v3442_v34, %v2057_v22  ;;  %v3551_v45 = vld [vmem:[#allocation2 + $0x1b8] sm:$0xff] }
 0x140   :  { %v1757_v17 = vadd.f32 %v1741_v54, %v1647_v33  ;;  %v1694_v57 = vmul.f32 %v3420_v37, %v2083_v40  ;;  %v1726_v50 = vmul.f32 %v3449_v24, %v2090_v42  ;;  %v1600_v32 = vadd.f32 %v1584_v5, %v1568_v59 }
 0x141   :  { %v1774_v52 = vmul.f32 %v3500_v46, %v2092_v43  ;;  %v1788_v38 = vmul.f32 %v3479_v35, %v2094_v44  ;;  %v1816_v13 = vmul.f32 %v3310_v15, %v3505_v10  ;;  %v1480_v0 = vrot.slane %v3493_v39, 7 }
 0x142   :  { %v1843_v63 = vadd.f32 %v1829_v8, %v1757_v17  ;;  %v1710_v53 = vadd.f32 %v1694_v57, %v1678_v36  ;;  %v3525_v41 = vsel %vm127_vm1, %v1528_v12, 0.0  ;;  %v1632_v1 = vadd.f32 %v1616_v14, %v1600_v32 }
 0x143   :  { %v1802_v62 = vadd.f32 %v1788_v38, %v1774_v52  ;;  %v1569_v58 = vmul.f32 %v3431_v51, %v2051_v19  ;;  %v1585_v29 = vmul.f32 %v3388_v31, %v2053_v20  ;;  %v3532_v7 = vsel %vm79_vm0, %v1479_v28, %v1480_v0 }
 0x144   :  { %1860 = vst [vmem:[#allocation7 + $0x188] sm:$0xff] %v1843_v63  ;;  %v1742_v61 = vadd.f32 %v1726_v50, %v1710_v53  ;;  %v1617_v9 = vmul.f32 %v3424_v6, %v2055_v21  ;;  %v1679_v55 = vmul.f32 %v3475_v3, %v2057_v22  ;;  %v1648_v18 = vadd.f32 %v3324_v60, %v1632_v1 }
 0x145   :  { %v1830_v25 = vadd.f32 %v1816_v13, %v1802_v62  ;;  %v1601_v51 = vadd.f32 %v1585_v29, %v1569_v58  ;;  %v1695_v31 = vmul.f32 %v3433_v2, %v2083_v40  ;;  %v1727_v30 = vmul.f32 %v3467_v49, %v2090_v42 }
 0x146   :  { %v1775_v16 = vmul.f32 %v3532_v7, %v2092_v43  ;;  %v1789_v6 = vmul.f32 %v3493_v39, %v2094_v44  ;;  %v1817_v4 = vmul.f32 %v3310_v15, %v3525_v41  ;;  %v1758_v27 = vadd.f32 %v1742_v61, %v1648_v18 }
 0x147   :  { %v1633_v26 = vadd.f32 %v1617_v9, %v1601_v51  ;;  %v1711_v28 = vadd.f32 %v1695_v31, %v1679_v55  ;;  %v1482_v11 = vrot.slane %v3538_v48, 7  ;;  %v1530_v12 = vrot.slane %v3538_v48, 1  ;;  %v3596_v31 = vld [vmem:[#allocation2 + $0x1c0] sm:$0xff] }
 0x148   :  { %v1803_v47 = vadd.f32 %v1789_v6, %v1775_v16  ;;  %v1531_v33 = vrot.slane %v3551_v45, 1  ;;  %v1570_v54 = vmul.f32 %v3442_v34, %v2051_v19  ;;  %v1844_v59 = vadd.f32 %v1830_v25, %v1758_v27 }
 0x149   :  { %v1649_v8 = vadd.f32 %v3324_v60, %v1633_v26  ;;  %v1743_v5 = vadd.f32 %v1727_v30, %v1711_v28  ;;  %v3560_v14 = vsel %vm79_vm0, 0.0, %v1482_v11  ;;  %v1586_v57 = vmul.f32 %v3420_v37, %v2053_v20 }
 0x14a   :  { %v1831_v17 = vadd.f32 %v1817_v4, %v1803_v47  ;;  %v3563_v36 = vsel %vm127_vm1, %v1530_v12, %v1531_v33  ;;  %v1618_v50 = vmul.f32 %v3449_v24, %v2055_v21  ;;  %1861 = vst [vmem:[#allocation7 + $0x190] sm:$0xff] %v1844_v59  ;;  %v1680_v34 = vmul.f32 %v3500_v46, %v2057_v22  ;;  %v3609_v47 = vld [vmem:[#allocation2 + $0x1c8] sm:$0xff] }
 0x14b   :  { %v1759_v32 = vadd.f32 %v1743_v5, %v1649_v8  ;;  %v1696_v52 = vmul.f32 %v3479_v35, %v2083_v40  ;;  %v1728_v38 = vmul.f32 %v3505_v10, %v2090_v42  ;;  %v1602_v13 = vadd.f32 %v1586_v57, %v1570_v54 }
 0x14c   :  { %v1776_v63 = vmul.f32 %v3560_v14, %v2092_v43  ;;  %v1790_v37 = vmul.f32 %v3538_v48, %v2094_v44  ;;  %v1818_v24 = vmul.f32 %v3310_v15, %v3563_v36  ;;  %v1483_v1 = vrot.slane %v3551_v45, 7 }
 0x14d   :  { %v1845_v53 = vadd.f32 %v1831_v17, %v1759_v32  ;;  %v1712_v0 = vadd.f32 %v1696_v52, %v1680_v34  ;;  %v3583_v62 = vsel %vm127_vm1, %v1531_v33, 0.0  ;;  %v1634_v58 = vadd.f32 %v1618_v50, %v1602_v13 }
 0x14e   :  { %v1804_v29 = vadd.f32 %v1790_v37, %v1776_v63  ;;  %v1571_v61 = vmul.f32 %v3475_v3, %v2051_v19  ;;  %v1587_v9 = vmul.f32 %v3433_v2, %v2053_v20  ;;  %v3590_v18 = vsel %vm79_vm0, %v1482_v11, %v1483_v1 }
 0x14f   :  { %1862 = vst [vmem:[#allocation7 + $0x198] sm:$0xff] %v1845_v53  ;;  %v1744_v55 = vadd.f32 %v1728_v38, %v1712_v0  ;;  %v1619_v25 = vmul.f32 %v3467_v49, %v2055_v21  ;;  %v1681_v51 = vmul.f32 %v3532_v7, %v2057_v22  ;;  %v1650_v30 = vadd.f32 %v3324_v60, %v1634_v58 }
 0x150   :  { %v1832_v16 = vadd.f32 %v1818_v24, %v1804_v29  ;;  %v1603_v3 = vadd.f32 %v1587_v9, %v1571_v61  ;;  %v1697_v2 = vmul.f32 %v3493_v39, %v2083_v40  ;;  %v1729_v6 = vmul.f32 %v3525_v41, %v2090_v42 }
 0x151   :  { %v1777_v4 = vmul.f32 %v3590_v18, %v2092_v43  ;;  %v1791_v49 = vmul.f32 %v3551_v45, %v2094_v44  ;;  %v1819_v27 = vmul.f32 %v3310_v15, %v3583_v62  ;;  %v1760_v26 = vadd.f32 %v1744_v55, %v1650_v30 }
 0x152   :  { %v1635_v28 = vadd.f32 %v1619_v25, %v1603_v3  ;;  %v1713_v11 = vadd.f32 %v1697_v2, %v1681_v51  ;;  %v1485_v12 = vrot.slane %v3596_v31, 7  ;;  %v1533_v54 = vrot.slane %v3596_v31, 1  ;;  %v3654_v2 = vld [vmem:[#allocation2 + $0x1d0] sm:$0xff] }
 0x153   :  { %v1805_v33 = vadd.f32 %v1791_v49, %v1777_v4  ;;  %v1534_v59 = vrot.slane %v3609_v47, 1  ;;  %v1572_v8 = vmul.f32 %v3500_v46, %v2051_v19  ;;  %v1846_v5 = vadd.f32 %v1832_v16, %v1760_v26 }
 0x154   :  { %v1651_v17 = vadd.f32 %v3324_v60, %v1635_v28  ;;  %v1745_v57 = vadd.f32 %v1729_v6, %v1713_v11  ;;  %v3618_v50 = vsel %vm79_vm0, 0.0, %v1485_v12  ;;  %v1588_v52 = vmul.f32 %v3479_v35, %v2053_v20 }
 0x155   :  { %v1833_v32 = vadd.f32 %v1819_v27, %v1805_v33  ;;  %v3621_v34 = vsel %vm127_vm1, %v1533_v54, %v1534_v59  ;;  %v1620_v38 = vmul.f32 %v3505_v10, %v2055_v21  ;;  %1863 = vst [vmem:[#allocation7 + $0x1a0] sm:$0xff] %v1846_v5  ;;  %v1682_v46 = vmul.f32 %v3560_v14, %v2057_v22  ;;  %v3667_v33 = vld [vmem:[#allocation2 + $0x1d8] sm:$0xff] }
 0x156   :  { %v1761_v13 = vadd.f32 %v1745_v57, %v1651_v17  ;;  %v1698_v63 = vmul.f32 %v3538_v48, %v2083_v40  ;;  %v1730_v37 = vmul.f32 %v3563_v36, %v2090_v42  ;;  %v1604_v24 = vadd.f32 %v1588_v52, %v1572_v8 }
 0x157   :  { %v1778_v53 = vmul.f32 %v3618_v50, %v2092_v43  ;;  %v1792_v35 = vmul.f32 %v3596_v31, %v2094_v44  ;;  %v1820_v10 = vmul.f32 %v3310_v15, %v3621_v34  ;;  %v1486_v58 = vrot.slane %v3609_v47, 7 }
 0x158   :  { %v1847_v0 = vadd.f32 %v1833_v32, %v1761_v13  ;;  %v1714_v1 = vadd.f32 %v1698_v63, %v1682_v46  ;;  %v3641_v29 = vsel %vm127_vm1, %v1534_v59, 0.0  ;;  %v1636_v61 = vadd.f32 %v1620_v38, %v1604_v24 }
 0x159   :  { %v1806_v9 = vadd.f32 %v1792_v35, %v1778_v53  ;;  %v1573_v55 = vmul.f32 %v3532_v7, %v2051_v19  ;;  %v1589_v25 = vmul.f32 %v3493_v39, %v2053_v20  ;;  %v3648_v30 = vsel %vm79_vm0, %v1485_v12, %v1486_v58 }
 0x15a   :  { %1864 = vst [vmem:[#allocation7 + $0x1a8] sm:$0xff] %v1847_v0  ;;  %v1746_v51 = vadd.f32 %v1730_v37, %v1714_v1  ;;  %v1621_v16 = vmul.f32 %v3525_v41, %v2055_v21  ;;  %v1683_v3 = vmul.f32 %v3590_v18, %v2057_v22  ;;  %v1652_v6 = vadd.f32 %v3324_v60, %v1636_v61 }
 0x15b   :  { %v1834_v4 = vadd.f32 %v1820_v10, %v1806_v9  ;;  %v1605_v7 = vadd.f32 %v1589_v25, %v1573_v55  ;;  %v1699_v39 = vmul.f32 %v3551_v45, %v2083_v40  ;;  %v1731_v49 = vmul.f32 %v3583_v62, %v2090_v42 }
 0x15c   :  { %v1779_v27 = vmul.f32 %v3648_v30, %v2092_v43  ;;  %v1793_v41 = vmul.f32 %v3609_v47, %v2094_v44  ;;  %v1821_v26 = vmul.f32 %v3310_v15, %v3641_v29  ;;  %v1762_v28 = vadd.f32 %v1746_v51, %v1652_v6 }
 0x15d   :  { %v1637_v11 = vadd.f32 %v1621_v16, %v1605_v7  ;;  %v1715_v12 = vadd.f32 %v1699_v39, %v1683_v3  ;;  %v1488_v54 = vrot.slane %v3654_v2, 7  ;;  %v1536_v8 = vrot.slane %v3654_v2, 1  ;;  %v3712_v39 = vld [vmem:[#allocation2 + $0x1e0] sm:$0xff] }
 0x15e   :  { %v1807_v59 = vadd.f32 %v1793_v41, %v1779_v27  ;;  %v1537_v5 = vrot.slane %v3667_v33, 1  ;;  %v1574_v17 = vmul.f32 %v3560_v14, %v2051_v19  ;;  %v1848_v57 = vadd.f32 %v1834_v4, %v1762_v28 }
 0x15f   :  { %v1653_v32 = vadd.f32 %v3324_v60, %v1637_v11  ;;  %v1747_v52 = vadd.f32 %v1731_v49, %v1715_v12  ;;  %v3676_v38 = vsel %vm79_vm0, 0.0, %v1488_v54  ;;  %v1590_v63 = vmul.f32 %v3538_v48, %v2053_v20 }
 0x160   :  { %v1835_v13 = vadd.f32 %v1821_v26, %v1807_v59  ;;  %v3679_v46 = vsel %vm127_vm1, %v1536_v8, %v1537_v5  ;;  %v1622_v37 = vmul.f32 %v3563_v36, %v2055_v21  ;;  %1865 = vst [vmem:[#allocation7 + $0x1b0] sm:$0xff] %v1848_v57  ;;  %v1684_v14 = vmul.f32 %v3618_v50, %v2057_v22  ;;  %v3725_v59 = vld [vmem:[#allocation2 + $0x1e8] sm:$0xff] }
 0x161   :  { %v1763_v24 = vadd.f32 %v1747_v52, %v1653_v32  ;;  %v1700_v53 = vmul.f32 %v3596_v31, %v2083_v40  ;;  %v1732_v35 = vmul.f32 %v3621_v34, %v2090_v42  ;;  %v1606_v10 = vadd.f32 %v1590_v63, %v1574_v17 }
 0x162   :  { %v1780_v0 = vmul.f32 %v3676_v38, %v2092_v43  ;;  %v1794_v48 = vmul.f32 %v3654_v2, %v2094_v44  ;;  %v1822_v36 = vmul.f32 %v3310_v15, %v3679_v46  ;;  %v1489_v61 = vrot.slane %v3667_v33, 7 }
 0x163   :  { %v1849_v1 = vadd.f32 %v1835_v13, %v1763_v24  ;;  %v1716_v58 = vadd.f32 %v1700_v53, %v1684_v14  ;;  %v3699_v9 = vsel %vm127_vm1, %v1537_v5, 0.0  ;;  %v1638_v55 = vadd.f32 %v1622_v37, %v1606_v10 }
 0x164   :  { %v1808_v25 = vadd.f32 %v1794_v48, %v1780_v0  ;;  %v1575_v51 = vmul.f32 %v3590_v18, %v2051_v19  ;;  %v1591_v16 = vmul.f32 %v3551_v45, %v2053_v20  ;;  %v3706_v6 = vsel %vm79_vm0, %v1488_v54, %v1489_v61 }
 0x165   :  { %1866 = vst [vmem:[#allocation7 + $0x1b8] sm:$0xff] %v1849_v1  ;;  %v1748_v3 = vadd.f32 %v1732_v35, %v1716_v58  ;;  %v1623_v4 = vmul.f32 %v3583_v62, %v2055_v21  ;;  %v1685_v7 = vmul.f32 %v3648_v30, %v2057_v22  ;;  %v1654_v49 = vadd.f32 %v3324_v60, %v1638_v55 }
 0x166   :  { %v1836_v27 = vadd.f32 %v1822_v36, %v1808_v25  ;;  %v1607_v18 = vadd.f32 %v1591_v16, %v1575_v51  ;;  %v1701_v45 = vmul.f32 %v3609_v47, %v2083_v40  ;;  %v1733_v41 = vmul.f32 %v3641_v29, %v2090_v42 }
 0x167   :  { %v1781_v26 = vmul.f32 %v3706_v6, %v2092_v43  ;;  %v1795_v62 = vmul.f32 %v3667_v33, %v2094_v44  ;;  %v1823_v28 = vmul.f32 %v3310_v15, %v3699_v9  ;;  %v1764_v11 = vadd.f32 %v1748_v3, %v1654_v49 }
 0x168   :  { %v1639_v12 = vadd.f32 %v1623_v4, %v1607_v18  ;;  %v1717_v54 = vadd.f32 %v1701_v45, %v1685_v7  ;;  %v1491_v8 = vrot.slane %v3712_v39, 7  ;;  %v1539_v17 = vrot.slane %v3712_v39, 1 }
 0x169   :  { %v1809_v5 = vadd.f32 %v1795_v62, %v1781_v26  ;;  %v1540_v57 = vrot.slane %v3725_v59, 1  ;;  %v1576_v32 = vmul.f32 %v3618_v50, %v2051_v19  ;;  %v1850_v52 = vadd.f32 %v1836_v27, %v1764_v11  ;;  %v3773_v62 = vld [vmem:[#allocation2 + $0x1f0] sm:$0xff] }
 0x16a   :  { %v1655_v13 = vadd.f32 %v3324_v60, %v1639_v12  ;;  %v1749_v63 = vadd.f32 %v1733_v41, %v1717_v54  ;;  %v3734_v37 = vsel %vm79_vm0, 0.0, %v1491_v8  ;;  %v1592_v53 = vmul.f32 %v3596_v31, %v2053_v20 }
 0x16b   :  { %v1837_v24 = vadd.f32 %v1823_v28, %v1809_v5  ;;  %v3737_v14 = vsel %vm127_vm1, %v1539_v17, %v1540_v57  ;;  %v1624_v35 = vmul.f32 %v3621_v34, %v2055_v21  ;;  %1867 = vst [vmem:[#allocation7 + $0x1c0] sm:$0xff] %v1850_v52  ;;  %v1686_v50 = vmul.f32 %v3676_v38, %v2057_v22 }
 0x16c   :  { %v1765_v10 = vadd.f32 %v1749_v63, %v1655_v13  ;;  %v1702_v0 = vmul.f32 %v3654_v2, %v2083_v40  ;;  %v1734_v48 = vmul.f32 %v3679_v46, %v2090_v42  ;;  %v1608_v36 = vadd.f32 %v1592_v53, %v1576_v32  ;;  %v1453_v53 = vld [vmem:[#allocation2 + $0x1f8] sm:$0xff] }
 0x16d   :  { %v1782_v1 = vmul.f32 %v3734_v37, %v2092_v43  ;;  %v1796_v31 = vmul.f32 %v3712_v39, %v2094_v44  ;;  %v1824_v34 = vmul.f32 %v3310_v15, %v3737_v14  ;;  %v1492_v55 = vrot.slane %v3725_v59, 7 }
 0x16e   :  { %v1851_v58 = vadd.f32 %v1837_v24, %v1765_v10  ;;  %v1718_v61 = vadd.f32 %v1702_v0, %v1686_v50  ;;  %v3757_v25 = vsel %vm127_vm1, %v1540_v57, 0.0  ;;  %v1640_v51 = vadd.f32 %v1624_v35, %v1608_v36 }
 0x16f   :  { %v1810_v16 = vadd.f32 %v1796_v31, %v1782_v1  ;;  %v1577_v3 = vmul.f32 %v3648_v30, %v2051_v19  ;;  %v1593_v4 = vmul.f32 %v3609_v47, %v2053_v20  ;;  %v3764_v49 = vsel %vm79_vm0, %v1491_v8, %v1492_v55 }
 0x170   :  { %1868 = vst [vmem:[#allocation7 + $0x1c8] sm:$0xff] %v1851_v58  ;;  %v1750_v7 = vadd.f32 %v1734_v48, %v1718_v61  ;;  %v1625_v27 = vmul.f32 %v3641_v29, %v2055_v21  ;;  %v1687_v18 = vmul.f32 %v3706_v6, %v2057_v22  ;;  %v1656_v45 = vadd.f32 %v3324_v60, %v1640_v51 }
 0x171   :  { %v1838_v41 = vadd.f32 %v1824_v34, %v1810_v16  ;;  %v1609_v26 = vadd.f32 %v1593_v4, %v1577_v3  ;;  %v1703_v30 = vmul.f32 %v3667_v33, %v2083_v40  ;;  %v1735_v47 = vmul.f32 %v3699_v9, %v2090_v42 }
 0x172   :  { %v1783_v28 = vmul.f32 %v3764_v49, %v2092_v43  ;;  %v1797_v29 = vmul.f32 %v3725_v59, %v2094_v44  ;;  %v1825_v11 = vmul.f32 %v3310_v15, %v3757_v25  ;;  %v1766_v12 = vadd.f32 %v1750_v7, %v1656_v45 }
 0x173   :  { %v1641_v54 = vadd.f32 %v1625_v27, %v1609_v26  ;;  %v1719_v8 = vadd.f32 %v1703_v30, %v1687_v18  ;;  %v1578_v5 = vmul.f32 %v3676_v38, %v2051_v19  ;;  %v1594_v57 = vmul.f32 %v3654_v2, %v2053_v20 }
 0x174   :  { %v1811_v17 = vadd.f32 %v1797_v29, %v1783_v28  ;;  %v1626_v32 = vmul.f32 %v3679_v46, %v2055_v21  ;;  %v1664_v52 = vrot.slane %v3773_v62, 7  ;;  %v1852_v13 = vadd.f32 %v1838_v41, %v1766_v12 }
 0x175   :  { %v1657_v63 = vadd.f32 %v3324_v60, %v1641_v54  ;;  %v1751_v24 = vadd.f32 %v1735_v47, %v1719_v8  ;;  %v1670_v35 = vrot.slane %v3773_v62, 1  ;;  %v1610_v50 = vadd.f32 %v1594_v57, %v1578_v5 }
 0x176   :  { %v1839_v10 = vadd.f32 %v1825_v11, %v1811_v17  ;;  %v1669_v38 = vsel %vm79_vm0, 0.0, %v1664_v52  ;;  %v1671_v0 = vrot.slane %v1453_v53, 1  ;;  %1869 = vst [vmem:[#allocation7 + $0x1d0] sm:$0xff] %v1852_v13  ;;  %v1688_v2 = vmul.f32 %v3734_v37, %v2057_v22 }
 0x177   :  { %v1767_v48 = vadd.f32 %v1751_v24, %v1657_v63  ;;  %v1704_v46 = vmul.f32 %v3712_v39, %v2083_v40  ;;  %v1736_v36 = vmul.f32 %v3737_v14, %v2090_v42  ;;  %v1642_v1 = vadd.f32 %v1626_v32, %v1610_v50 }
 0x178   :  { %v1672_v31 = vsel %vm127_vm1, %v1670_v35, %v1671_v0  ;;  %v1784_v34 = vmul.f32 %v1669_v38, %v2092_v43  ;;  %v1798_v58 = vmul.f32 %v3773_v62, %v2094_v44  ;;  %v1579_v16 = vmul.f32 %v3706_v6, %v2051_v19 }
 0x179   :  { %v1853_v61 = vadd.f32 %v1839_v10, %v1767_v48  ;;  %v1720_v55 = vadd.f32 %v1704_v46, %v1688_v2  ;;  %v1826_v51 = vmul.f32 %v3310_v15, %v1672_v31  ;;  %v1658_v3 = vadd.f32 %v3324_v60, %v1642_v1 }
 0x17a   :  { %v1812_v4 = vadd.f32 %v1798_v58, %v1784_v34  ;;  %v1595_v7 = vmul.f32 %v3667_v33, %v2053_v20  ;;  %v1627_v27 = vmul.f32 %v3699_v9, %v2055_v21  ;;  %v1665_v45 = vrot.slane %v1453_v53, 7 }
 0x17b   :  { %1870 = vst [vmem:[#allocation7 + $0x1d8] sm:$0xff] %v1853_v61  ;;  %v1752_v18 = vadd.f32 %v1736_v36, %v1720_v55  ;;  %v1675_v41 = vsel %vm127_vm1, %v1671_v0, 0.0  ;;  %v1689_v26 = vmul.f32 %v3764_v49, %v2057_v22  ;;  %v1705_v6 = vmul.f32 %v3725_v59, %v2083_v40 }
 0x17c   :  { %v1840_v30 = vadd.f32 %v1826_v51, %v1812_v4  ;;  %v1611_v47 = vadd.f32 %v1595_v7, %v1579_v16  ;;  %v1737_v28 = vmul.f32 %v3757_v25, %v2090_v42  ;;  %v1666_v29 = vsel %vm79_vm0, %v1664_v52, %v1665_v45 }
 0x17d   :  { %v1768_v33 = vadd.f32 %v1752_v18, %v1658_v3  ;;  %v1799_v9 = vmul.f32 %v1453_v53, %v2094_v44  ;;  %v1827_v11 = vmul.f32 %v3310_v15, %v1675_v41  ;;  %v1721_v54 = vadd.f32 %v1705_v6, %v1689_v26 }
 0x17e   :  { %v1643_v12 = vadd.f32 %v1627_v27, %v1611_v47  ;;  %v1785_v8 = vmul.f32 %v1666_v29, %v2092_v43  ;;  %v1580_v5 = vmul.f32 %v3734_v37, %v2051_v19  ;;  %v1596_v57 = vmul.f32 %v3712_v39, %v2053_v20 }
 0x17f   :  { %v1854_v17 = vadd.f32 %v1840_v30, %v1768_v33  ;;  %v1628_v32 = vmul.f32 %v3737_v14, %v2055_v21  ;;  %v1690_v52 = vmul.f32 %v1669_v38, %v2057_v22  ;;  %v1753_v13 = vadd.f32 %v1737_v28, %v1721_v54 }
 0x180   :  { %v1659_v44 = vadd.f32 %v3324_v60, %v1643_v12  ;;  %v1813_v15 = vadd.f32 %v1799_v9, %v1785_v8  ;;  %v1706_v63 = vmul.f32 %v3773_v62, %v2083_v40  ;;  %v1612_v43 = vadd.f32 %v1596_v57, %v1580_v5 }
 0x181   :  { %1871 = vst [vmem:[#allocation7 + $0x1e0] sm:$0xff] %v1854_v17  ;;  %v1738_v37 = vmul.f32 %v1672_v31, %v2090_v42  ;;  %v1581_v24 = vmul.f32 %v3764_v49, %v2051_v19  ;;  %v1597_v39 = vmul.f32 %v3725_v59, %v2053_v20  ;;  %v1629_v50 = vmul.f32 %v3757_v25, %v2055_v21 }
 0x182   :  { %v1769_v14 = vadd.f32 %v1753_v13, %v1659_v44  ;;  %v1841_v35 = vadd.f32 %v1827_v11, %v1813_v15  ;;  %v1722_v10 = vadd.f32 %v1706_v63, %v1690_v52  ;;  %v1644_v38 = vadd.f32 %v1628_v32, %v1612_v43 }
 0x183   :  { %v1613_v0 = vadd.f32 %v1597_v39, %v1581_v24  ;;  %v1691_v62 = vmul.f32 %v1666_v29, %v2057_v22  ;;  %v1707_v48 = vmul.f32 %v1453_v53, %v2083_v40  ;;  %v1739_v36 = vmul.f32 %v1675_v41, %v2090_v42 }
 0x184   :  { %v1855_v2 = vadd.f32 %v1841_v35, %v1769_v14  ;;  %v1754_v46 = vadd.f32 %v1738_v37, %v1722_v10  ;;  %v1660_v19 = vadd.f32 %v3324_v60, %v1644_v38 }
 0x185   :  { %v1645_v49 = vadd.f32 %v1629_v50, %v1613_v0  ;;  %v1723_v20 = vadd.f32 %v1707_v48, %v1691_v62 }
 0x186   :  { %1872 = vst [vmem:[#allocation7 + $0x1e8] sm:$0xff] %v1855_v2  ;;  %v1770_v59 = vadd.f32 %v1754_v46, %v1660_v19 }
 0x187   :  { %v1661_v1 = vadd.f32 %v3324_v60, %v1645_v49  ;;  %v1755_v31 = vadd.f32 %v1739_v36, %v1723_v20 }
 0x188   :  { %v1856_v21 = vadd.f32 %v1770_v59, %v2963_v23 }
 0x189   :  { %v1771_v22 = vadd.f32 %v1755_v31, %v1661_v1 }
 0x18a   :  { %1873 = vst [vmem:[#allocation7 + $0x1f0] sm:$0xff] %v1856_v21 }
 0x18b   :  { %v1857_v40 = vadd.f32 %v1771_v22, %v2979_v56 }
 0x18d   :  { %1874 = vst [vmem:[#allocation7 + $0x1f8] sm:$0xff] %v1857_v40 }
 0x18e   :  { %1960 = shalt.err (!%p1957_p6)
}
 0x18f   :  { %s1961_s19 = scalar_lea.hbm %s3864_s3, 8192 }
 0x190   :  { %p1962_p7 = scmp.ne.s32.totalorder %s3864_s3, %s1961_s19  ;;  %p1965_p8 = scmp.lt.u32.totalorder %s1961_s19, %s3864_s3 }
 0x192   :  { %p1967_p9 = pnand %p1965_p8, %p1962_p7 }
 0x194   :  { %1970 = shalt.err (!%p1967_p9)
}
 0x195   :  { %1886 = dma.vmem_to_hbm [thread:$0]  %s1881_s15, 8192, %s3864_s3, [#allocation4], %s1978_s22, %s1978_s22, %s1979_s23  }
 0x196   :  { %1975 = dma.done.wait [#allocation4], 8192  }
 0x197   :  { %1976 = vsyncadd [#allocation4], 4294959104 }
 0x198   :  { %1890 = vsyncpa [#allocation3], 1 }
 0x199   :  { %1891 = vsyncpa [#allocation6], 1 }
 0x19a   :  { %1892 = vsyncpa [#allocation4], 1 }

</bundles_post_ra>
